<compile_context>
chip_gen: v5e
topology: v5e:2x2
jax: 0.10.0
libtpu: 0.0.40
codegen_flags: <defaults>
</compile_context>

<pallas_src>
import jax
import jax.numpy as jnp
from jax.experimental import pallas as pl
from jax.experimental.pallas import tpu as pltpu


# ----------------------------- Pallas kernel ------------------------------- #

def _lstm_encoder_kernel(lens_ref,   # VMEM (Bp, 1) int32
                         x2d_ref,    # VMEM (T*Bp, E) f32   (batch pre-padded to Bp)
                         hc0_ref,    # VMEM (4, Bp, H)      [h0_l0, h0_l1, c0_l0, c0_l1]
                         wpk_ref,    # VMEM (E+3H+8, 4H)    [W_ih0^T; W_ih1^T; W_hh1^T; W_hh0^T; bias tile]
                         out_ref,    # VMEM (T, Bp, H)
                         hcn_ref):   # VMEM (4, Bp, H)      [h_n_l0, h_n_l1, c_n_l0, c_n_l1]
    T, Bp, H = out_ref.shape
    E = x2d_ref.shape[1]
    off = E + 3 * H

    lens = lens_ref[...]                                   # (Bp, 1) int32

    # ---- unpack the single packed weight operand (static, tile-aligned) ---- #
    wih0 = wpk_ref[0:E, :]                                 # (E, 4H)   = W_ih0^T
    wst = wpk_ref[E:off, :]                                # (3H, 4H)  = [W_ih1^T; W_hh1^T; W_hh0^T]
    btile = wpk_ref[off:off + 8, :]                        # (8, 4H)   row0 = b0, row1 = b1
    b0 = btile[0:1, :]
    b1b = jnp.broadcast_to(btile[1:2, :], (Bp, 4 * H))     # hoisted per-step bias broadcast

    # ---- hoisted layer-0 input projection: one MXU matmul for all steps ---- #
    xw0 = jnp.dot(x2d_ref[...], wih0,
                  preferred_element_type=jnp.float32) + b0          # (T*Bp, 4H)

    def gates_to_hc(gates, c_prev):
        sig = jax.nn.sigmoid(gates)                        # one full-width EUP sigmoid
        i = sig[:, 0 * H:1 * H]
        f = sig[:, 1 * H:2 * H]
        o = sig[:, 3 * H:4 * H]
        g = jnp.tanh(gates[:, 2 * H:3 * H])                # tanh only on the g slice
        c_new = f * c_prev + i * g
        h_new = o * jnp.tanh(c_new)
        return h_new, c_new

    # recurrent state carried in vregs (no scratch, no init branch)
    h0p = hc0_ref[0]
    h1p = hc0_ref[1]
    c0p = hc0_ref[2]
    c1p = hc0_ref[3]

    # prologue: layer-0 hidden contribution for step 0 (W_hh0^T = last H rows of wst)
    hh0 = jnp.dot(h0p, wst[2 * H:3 * H, :], preferred_element_type=jnp.float32)

    zBH = jnp.zeros((Bp, H), jnp.float32)                  # hoisted zero pad block

    # T is small and static -> full unroll, all slices static & sublane-aligned
    for t in range(T):
        valid = lens > t                                   # (Bp, 1) bool

        # layer 0, step t: hh contribution came from the previous fused dot
        gates0 = xw0[t * Bp:(t + 1) * Bp, :] + hh0
        h0n, c0n = gates_to_hc(gates0, c0p)
        h0p = jnp.where(valid, h0n, h0p)                   # packed-seq masking
        c0p = jnp.where(valid, c0n, c0p)

        # inter-layer dropout (p=0.2) is identity in eval mode
        # fused MXU push: layer-1 gates @ t  AND  layer-0 hh contribution @ t+1
        top = jnp.concatenate([h0n, h1p, zBH], axis=-1)    # (Bp, 3H)
        bot = jnp.concatenate([zBH, zBH, h0p], axis=-1)    # (Bp, 3H)
        fused = jnp.dot(jnp.concatenate([top, bot], axis=0), wst,
                        preferred_element_type=jnp.float32)          # (2Bp, 4H)
        gates1 = fused[0:Bp, :] + b1b
        hh0 = fused[Bp:2 * Bp, :]                          # consumed next iteration

        h1n, c1n = gates_to_hc(gates1, c1p)
        h1p = jnp.where(valid, h1n, h1p)
        c1p = jnp.where(valid, c1n, c1p)

        # pad_packed_sequence fills padded positions with zeros
        out_ref[t] = jnp.where(valid, h1n, zBH)

    hcn_ref[0] = h0p
    hcn_ref[1] = h1p
    hcn_ref[2] = c0p
    hcn_ref[3] = c1p


def encoder_lstm_pallas(embedded, seq_lengths, h0, c0, params):
    """embedded: (T, B, E) f32, seq_lengths: (B,) int, h0/c0: (2, B, H) f32."""
    T, B, E = embedded.shape
    H = h0.shape[-1]
    Bp = max(8, ((B + 7) // 8) * 8)          # pad batch to sublane multiple
    pad_b = Bp - B

    # -- param prep (done once per model in production; constant under jit) -- #
    wih0_t = params["w_ih0"].T                                        # (E, 4H)
    wst = jnp.concatenate([params["w_ih1"].T,
                           params["w_hh1"].T,
                           params["w_hh0"].T], axis=0)                # (3H, 4H)
    b0 = params["b_ih0"] + params["b_hh0"]
    b1 = params["b_ih1"] + params["b_hh1"]
    btile = jnp.zeros((8, 4 * H), jnp.float32).at[0].set(b0).at[1].set(b1)
    wpk = jnp.concatenate([wih0_t, wst, btile], axis=0)               # (E+3H+8, 4H)

    # -- data prep: pad batch to Bp, pack h0/c0, lens as small VMEM operand -- #
    x2d = jnp.pad(embedded, ((0, 0), (0, pad_b), (0, 0))).reshape(T * Bp, E)
    hc0 = jnp.concatenate([jnp.pad(h0, ((0, 0), (0, pad_b), (0, 0))),
                           jnp.pad(c0, ((0, 0), (0, pad_b), (0, 0)))], axis=0)
    lens = jnp.pad(seq_lengths.astype(jnp.int32), (0, pad_b)).reshape(Bp, 1)

    grid_spec = pltpu.PrefetchScalarGridSpec(
        num_scalar_prefetch=0,
        grid=(1,),
        in_specs=[
            pl.BlockSpec((Bp, 1), lambda i: (0, 0)),                  # seq lengths
            pl.BlockSpec((T * Bp, E), lambda i: (0, 0)),              # x (flattened, padded)
            pl.BlockSpec((4, Bp, H), lambda i: (0, 0, 0)),            # packed h0/c0
            pl.BlockSpec((E + 3 * H + 8, 4 * H), lambda i: (0, 0)),   # packed weights/biases
        ],
        out_specs=[
            pl.BlockSpec((T, Bp, H), lambda i: (0, 0, 0)),            # outputs
            pl.BlockSpec((4, Bp, H), lambda i: (0, 0, 0)),            # packed h_n/c_n
        ],
    )
    out_shape = [
        jax.ShapeDtypeStruct((T, Bp, H), jnp.float32),
        jax.ShapeDtypeStruct((4, Bp, H), jnp.float32),
    ]

    out_p, hcn = pl.pallas_call(
        _lstm_encoder_kernel,
        out_shape=out_shape,
        grid_spec=grid_spec,
        compiler_params=pltpu.CompilerParams(
            dimension_semantics=("arbitrary",)),
    )(lens, x2d, hc0, wpk)

    return out_p[:, :B, :], hcn[0:2, :B, :], hcn[2:4, :B, :]


# ------------------------------ wrapper (glue) ------------------------------ #

def encoder_forward(tokens, seq_lengths, h0, c0, emb_table, params):
    """Full Encoder.forward: embedding lookup (glue) + single Pallas LSTM kernel."""
    embedded = emb_table[tokens]                  # (T, B, E), JAX gather glue
    # dropout(p=0.2) on embedded -> identity (eval mode)
    outputs, h_n, c_n = encoder_lstm_pallas(embedded, seq_lengths, h0, c0, params)
    return outputs, (h_n, c_n)


# -------------------------- pure-JAX reference ------------------------------ #

def encoder_forward_ref(tokens, seq_lengths, h0, c0, emb_table, params):
    embedded = emb_table[tokens]
    T, B, E = embedded.shape

    def cell(x, h, c, w_ih, w_hh, b_ih, b_hh):
        gates = x @ w_ih.T + h @ w_hh.T + b_ih + b_hh
        i, f, g, o = jnp.split(gates, 4, axis=-1)
        c_new = jax.nn.sigmoid(f) * c + jax.nn.sigmoid(i) * jnp.tanh(g)
        h_new = jax.nn.sigmoid(o) * jnp.tanh(c_new)
        return h_new, c_new

    h = [h0[0], h0[1]]
    c = [c0[0], c0[1]]
    outs = []
    for t in range(T):
        valid = (seq_lengths > t)[:, None]
        h0n, c0n = cell(embedded[t], h[0], c[0],
                        params["w_ih0"], params["w_hh0"],
                        params["b_ih0"], params["b_hh0"])
        h1n, c1n = cell(h0n, h[1], c[1],
                        params["w_ih1"], params["w_hh1"],
                        params["b_ih1"], params["b_hh1"])
        h[0] = jnp.where(valid, h0n, h[0]); c[0] = jnp.where(valid, c0n, c[0])
        h[1] = jnp.where(valid, h1n, h[1]); c[1] = jnp.where(valid, c1n, c[1])
        outs.append(jnp.where(valid, h1n, 0.0))
    return jnp.stack(outs), (jnp.stack(h), jnp.stack(c))


# ---------------------------------- main ------------------------------------ #

if __name__ == "__main__":
    VOCAB, E, H, NLAYERS = 50, 32, 32, 2
    T, B = 8, 4

    key = jax.random.PRNGKey(0)
    keys = jax.random.split(key, 12)
    bound = 1.0 / jnp.sqrt(H)

    emb_table = jax.random.normal(keys[0], (VOCAB, E), jnp.float32)
    params = {
        "w_ih0": jax.random.uniform(keys[1], (4 * H, E), jnp.float32, -bound, bound),
        "w_hh0": jax.random.uniform(keys[2], (4 * H, H), jnp.float32, -bound, bound),
        "b_ih0": jax.random.uniform(keys[3], (4 * H,), jnp.float32, -bound, bound),
        "b_hh0": jax.random.uniform(keys[4], (4 * H,), jnp.float32, -bound, bound),
        "w_ih1": jax.random.uniform(keys[5], (4 * H, H), jnp.float32, -bound, bound),
        "w_hh1": jax.random.uniform(keys[6], (4 * H, H), jnp.float32, -bound, bound),
        "b_ih1": jax.random.uniform(keys[7], (4 * H,), jnp.float32, -bound, bound),
        "b_hh1": jax.random.uniform(keys[8], (4 * H,), jnp.float32, -bound, bound),
    }

    tokens = jax.random.randint(keys[9], (T, B), 0, VOCAB, jnp.int32)
    seq_lengths = jnp.array([8, 6, 5, 3], jnp.int32)   # sorted desc (pack_padded)
    h0 = jnp.zeros((NLAYERS, B, H), jnp.float32)       # Encoder.init_hidden
    c0 = jnp.zeros((NLAYERS, B, H), jnp.float32)

    outputs, (h_n, c_n) = jax.block_until_ready(
        encoder_forward(tokens, seq_lengths, h0, c0, emb_table, params))

    ref_out, (ref_h, ref_c) = encoder_forward_ref(
        tokens, seq_lengths, h0, c0, emb_table, params)

    assert outputs.shape == (T, B, H)
    assert h_n.shape == (NLAYERS, B, H) and c_n.shape == (NLAYERS, B, H)
    assert jnp.allclose(outputs, ref_out, atol=1e-5), "outputs mismatch"
    assert jnp.allclose(h_n, ref_h, atol=1e-5), "h_n mismatch"
    assert jnp.allclose(c_n, ref_c, atol=1e-5), "c_n mismatch"

    print("KERNEL_OK")
</pallas_src>

<mosaic_0001>
module attributes {stable_mosaic.version = 11 : i64} {
  func.func @_lstm_encoder_kernel(%arg0: i32, %arg1: memref<8x1xi32, #tpu.memory_space<vmem>>, %arg2: memref<64x32xf32, #tpu.memory_space<vmem>>, %arg3: memref<4x8x32xf32, #tpu.memory_space<vmem>>, %arg4: memref<136x128xf32, #tpu.memory_space<vmem>>, %arg5: memref<8x8x32xf32, #tpu.memory_space<vmem>>, %arg6: memref<4x8x32xf32, #tpu.memory_space<vmem>>) attributes {dimension_semantics = [#tpu.dimension_semantics<arbitrary>], iteration_bounds = array<i64: 1>, scalar_prefetch = 0 : i64, scratch_operands = 0 : i64, tpu.core_type = #tpu.core_type<tc>, window_params = [{pipeline_mode = #tpu.pipeline_mode<synchronous>, transform_indices = @transform_0, window_bounds = array<i64: 8, 1>}, {pipeline_mode = #tpu.pipeline_mode<synchronous>, transform_indices = @transform_1, window_bounds = array<i64: 64, 32>}, {pipeline_mode = #tpu.pipeline_mode<synchronous>, transform_indices = @transform_2, window_bounds = array<i64: 4, 8, 32>}, {pipeline_mode = #tpu.pipeline_mode<synchronous>, transform_indices = @transform_3, window_bounds = array<i64: 136, 128>}, {pipeline_mode = #tpu.pipeline_mode<synchronous>, transform_indices = @transform_4, window_bounds = array<i64: 8, 8, 32>}, {pipeline_mode = #tpu.pipeline_mode<synchronous>, transform_indices = @transform_5, window_bounds = array<i64: 4, 8, 32>}]} {
    %c0 = arith.constant 0 : index
    %c0_0 = arith.constant 0 : index
    %0 = vector.load %arg1[%c0, %c0_0] : memref<8x1xi32, #tpu.memory_space<vmem>>, vector<8x1xi32>
    %c0_1 = arith.constant 0 : index
    %c0_2 = arith.constant 0 : index
    %1 = vector.load %arg4[%c0_1, %c0_2] : memref<136x128xf32, #tpu.memory_space<vmem>>, vector<32x128xf32>
    %c32 = arith.constant 32 : index
    %c0_3 = arith.constant 0 : index
    %2 = vector.load %arg4[%c32, %c0_3] : memref<136x128xf32, #tpu.memory_space<vmem>>, vector<96x128xf32>
    %c128 = arith.constant 128 : index
    %c0_4 = arith.constant 0 : index
    %3 = vector.load %arg4[%c128, %c0_4] : memref<136x128xf32, #tpu.memory_space<vmem>>, vector<8x128xf32>
    %4 = vector.extract_strided_slice %3 {offsets = [0, 0], sizes = [1, 128], strides = [1, 1]} : vector<8x128xf32> to vector<1x128xf32>
    %5 = vector.extract_strided_slice %3 {offsets = [1, 0], sizes = [1, 128], strides = [1, 1]} : vector<8x128xf32> to vector<1x128xf32>
    %6 = vector.shape_cast %5 : vector<1x128xf32> to vector<1x128xf32>
    %7 = vector.broadcast %6 : vector<1x128xf32> to vector<8x128xf32>
    %c0_5 = arith.constant 0 : index
    %c0_6 = arith.constant 0 : index
    %8 = vector.load %arg2[%c0_5, %c0_6] : memref<64x32xf32, #tpu.memory_space<vmem>>, vector<64x32xf32>
    %cst = arith.constant dense<0.000000e+00> : vector<64x128xf32>
    %9 = tpu.matmul %8, %1, %cst {dimension_numbers = #tpu.dot_dimension_numbers<[1], [0], [0], [1], [0, 0, 1, 1], [], []>} : vector<64x32xf32>, vector<32x128xf32>, vector<64x128xf32> -> vector<64x128xf32>
    %10 = vector.broadcast %4 : vector<1x128xf32> to vector<64x128xf32>
    %11 = arith.addf %9, %10 : vector<64x128xf32>
    %c0_7 = arith.constant 0 : index
    %c0_8 = arith.constant 0 : index
    %c0_9 = arith.constant 0 : index
    %12 = vector.load %arg3[%c0_7, %c0_8, %c0_9] : memref<4x8x32xf32, #tpu.memory_space<vmem>>, vector<1x8x32xf32>
    %13 = vector.shape_cast %12 : vector<1x8x32xf32> to vector<8x32xf32>
    %c1 = arith.constant 1 : index
    %c0_10 = arith.constant 0 : index
    %c0_11 = arith.constant 0 : index
    %14 = vector.load %arg3[%c1, %c0_10, %c0_11] : memref<4x8x32xf32, #tpu.memory_space<vmem>>, vector<1x8x32xf32>
    %15 = vector.shape_cast %14 : vector<1x8x32xf32> to vector<8x32xf32>
    %c2 = arith.constant 2 : index
    %c0_12 = arith.constant 0 : index
    %c0_13 = arith.constant 0 : index
    %16 = vector.load %arg3[%c2, %c0_12, %c0_13] : memref<4x8x32xf32, #tpu.memory_space<vmem>>, vector<1x8x32xf32>
    %17 = vector.shape_cast %16 : vector<1x8x32xf32> to vector<8x32xf32>
    %c3 = arith.constant 3 : index
    %c0_14 = arith.constant 0 : index
    %c0_15 = arith.constant 0 : index
    %18 = vector.load %arg3[%c3, %c0_14, %c0_15] : memref<4x8x32xf32, #tpu.memory_space<vmem>>, vector<1x8x32xf32>
    %19 = vector.shape_cast %18 : vector<1x8x32xf32> to vector<8x32xf32>
    %20 = vector.extract_strided_slice %2 {offsets = [64, 0], sizes = [32, 128], strides = [1, 1]} : vector<96x128xf32> to vector<32x128xf32>
    %cst_16 = arith.constant dense<0.000000e+00> : vector<8x128xf32>
    %21 = tpu.matmul %13, %20, %cst_16 {dimension_numbers = #tpu.dot_dimension_numbers<[1], [0], [0], [1], [0, 0, 1, 1], [], []>} : vector<8x32xf32>, vector<32x128xf32>, vector<8x128xf32> -> vector<8x128xf32>
    %cst_17 = arith.constant 0.000000e+00 : f32
    %22 = vector.broadcast %cst_17 : f32 to vector<8x32xf32>
    %c0_i32 = arith.constant 0 : i32
    %23 = vector.broadcast %c0_i32 : i32 to vector<8x1xi32>
    %24 = arith.cmpi sgt, %0, %23 : vector<8x1xi32>
    %25 = vector.extract_strided_slice %11 {offsets = [0, 0], sizes = [8, 128], strides = [1, 1]} : vector<64x128xf32> to vector<8x128xf32>
    %26 = arith.addf %25, %21 : vector<8x128xf32>
    %27 = arith.negf %26 : vector<8x128xf32>
    %28 = math.exp %27 : vector<8x128xf32>
    %cst_18 = arith.constant 1.000000e+00 : f32
    %29 = vector.broadcast %cst_18 : f32 to vector<8x128xf32>
    %30 = arith.addf %29, %28 : vector<8x128xf32>
    %31 = arith.divf %29, %30 : vector<8x128xf32>
    %32 = vector.extract_strided_slice %31 {offsets = [0, 0], sizes = [8, 32], strides = [1, 1]} : vector<8x128xf32> to vector<8x32xf32>
    %33 = vector.extract_strided_slice %31 {offsets = [0, 32], sizes = [8, 32], strides = [1, 1]} : vector<8x128xf32> to vector<8x32xf32>
    %34 = vector.extract_strided_slice %31 {offsets = [0, 96], sizes = [8, 32], strides = [1, 1]} : vector<8x128xf32> to vector<8x32xf32>
    %35 = vector.extract_strided_slice %26 {offsets = [0, 64], sizes = [8, 32], strides = [1, 1]} : vector<8x128xf32> to vector<8x32xf32>
    %36 = math.tanh %35 : vector<8x32xf32>
    %37 = arith.mulf %33, %17 : vector<8x32xf32>
    %38 = arith.mulf %32, %36 : vector<8x32xf32>
    %39 = arith.addf %37, %38 : vector<8x32xf32>
    %40 = math.tanh %39 : vector<8x32xf32>
    %41 = arith.mulf %34, %40 : vector<8x32xf32>
    %42 = vector.shape_cast %24 : vector<8x1xi1> to vector<8x1xi1>
    %43 = vector.broadcast %42 : vector<8x1xi1> to vector<8x32xi1>
    %44 = arith.select %43, %41, %13 : vector<8x32xi1>, vector<8x32xf32>
    %45 = vector.shape_cast %24 : vector<8x1xi1> to vector<8x1xi1>
    %46 = vector.broadcast %45 : vector<8x1xi1> to vector<8x32xi1>
    %47 = arith.select %46, %39, %17 : vector<8x32xi1>, vector<8x32xf32>
    %48 = tpu.concatenate %41, %15, %22 in 1 : vector<8x32xf32>, vector<8x32xf32>, vector<8x32xf32> -> vector<8x96xf32>
    %49 = tpu.concatenate %22, %22, %44 in 1 : vector<8x32xf32>, vector<8x32xf32>, vector<8x32xf32> -> vector<8x96xf32>
    %50 = tpu.concatenate %48, %49 in 0 : vector<8x96xf32>, vector<8x96xf32> -> vector<16x96xf32>
    %cst_19 = arith.constant dense<0.000000e+00> : vector<16x128xf32>
    %51 = tpu.matmul %50, %2, %cst_19 {dimension_numbers = #tpu.dot_dimension_numbers<[1], [0], [0], [1], [0, 0, 1, 1], [], []>} : vector<16x96xf32>, vector<96x128xf32>, vector<16x128xf32> -> vector<16x128xf32>
    %52 = vector.extract_strided_slice %51 {offsets = [0, 0], sizes = [8, 128], strides = [1, 1]} : vector<16x128xf32> to vector<8x128xf32>
    %53 = arith.addf %52, %7 : vector<8x128xf32>
    %54 = vector.extract_strided_slice %51 {offsets = [8, 0], sizes = [8, 128], strides = [1, 1]} : vector<16x128xf32> to vector<8x128xf32>
    %55 = arith.negf %53 : vector<8x128xf32>
    %56 = math.exp %55 : vector<8x128xf32>
    %cst_20 = arith.constant 1.000000e+00 : f32
    %57 = vector.broadcast %cst_20 : f32 to vector<8x128xf32>
    %58 = arith.addf %57, %56 : vector<8x128xf32>
    %59 = arith.divf %57, %58 : vector<8x128xf32>
    %60 = vector.extract_strided_slice %59 {offsets = [0, 0], sizes = [8, 32], strides = [1, 1]} : vector<8x128xf32> to vector<8x32xf32>
    %61 = vector.extract_strided_slice %59 {offsets = [0, 32], sizes = [8, 32], strides = [1, 1]} : vector<8x128xf32> to vector<8x32xf32>
    %62 = vector.extract_strided_slice %59 {offsets = [0, 96], sizes = [8, 32], strides = [1, 1]} : vector<8x128xf32> to vector<8x32xf32>
    %63 = vector.extract_strided_slice %53 {offsets = [0, 64], sizes = [8, 32], strides = [1, 1]} : vector<8x128xf32> to vector<8x32xf32>
    %64 = math.tanh %63 : vector<8x32xf32>
    %65 = arith.mulf %61, %19 : vector<8x32xf32>
    %66 = arith.mulf %60, %64 : vector<8x32xf32>
    %67 = arith.addf %65, %66 : vector<8x32xf32>
    %68 = math.tanh %67 : vector<8x32xf32>
    %69 = arith.mulf %62, %68 : vector<8x32xf32>
    %70 = vector.shape_cast %24 : vector<8x1xi1> to vector<8x1xi1>
    %71 = vector.broadcast %70 : vector<8x1xi1> to vector<8x32xi1>
    %72 = arith.select %71, %69, %15 : vector<8x32xi1>, vector<8x32xf32>
    %73 = vector.shape_cast %24 : vector<8x1xi1> to vector<8x1xi1>
    %74 = vector.broadcast %73 : vector<8x1xi1> to vector<8x32xi1>
    %75 = arith.select %74, %67, %19 : vector<8x32xi1>, vector<8x32xf32>
    %76 = vector.shape_cast %24 : vector<8x1xi1> to vector<8x1xi1>
    %77 = vector.broadcast %76 : vector<8x1xi1> to vector<8x32xi1>
    %78 = arith.select %77, %69, %22 : vector<8x32xi1>, vector<8x32xf32>
    %c0_21 = arith.constant 0 : index
    %c0_22 = arith.constant 0 : index
    %c0_23 = arith.constant 0 : index
    %79 = vector.load %arg5[%c0_21, %c0_22, %c0_23] : memref<8x8x32xf32, #tpu.memory_space<vmem>>, vector<1x8x32xf32>
    %80 = vector.shape_cast %79 : vector<1x8x32xf32> to vector<8x32xf32>
    %81 = vector.shape_cast %78 : vector<8x32xf32> to vector<1x8x32xf32>
    tpu.vector_store %arg5[%c0_21, %c0_22, %c0_23], %81 {strides = array<i32>} : memref<8x8x32xf32, #tpu.memory_space<vmem>>, vector<1x8x32xf32>,
    %c1_i32 = arith.constant 1 : i32
    %82 = vector.broadcast %c1_i32 : i32 to vector<8x1xi32>
    %83 = arith.cmpi sgt, %0, %82 : vector<8x1xi32>
    %84 = vector.extract_strided_slice %11 {offsets = [8, 0], sizes = [8, 128], strides = [1, 1]} : vector<64x128xf32> to vector<8x128xf32>
    %85 = arith.addf %84, %54 : vector<8x128xf32>
    %86 = arith.negf %85 : vector<8x128xf32>
    %87 = math.exp %86 : vector<8x128xf32>
    %cst_24 = arith.constant 1.000000e+00 : f32
    %88 = vector.broadcast %cst_24 : f32 to vector<8x128xf32>
    %89 = arith.addf %88, %87 : vector<8x128xf32>
    %90 = arith.divf %88, %89 : vector<8x128xf32>
    %91 = vector.extract_strided_slice %90 {offsets = [0, 0], sizes = [8, 32], strides = [1, 1]} : vector<8x128xf32> to vector<8x32xf32>
    %92 = vector.extract_strided_slice %90 {offsets = [0, 32], sizes = [8, 32], strides = [1, 1]} : vector<8x128xf32> to vector<8x32xf32>
    %93 = vector.extract_strided_slice %90 {offsets = [0, 96], sizes = [8, 32], strides = [1, 1]} : vector<8x128xf32> to vector<8x32xf32>
    %94 = vector.extract_strided_slice %85 {offsets = [0, 64], sizes = [8, 32], strides = [1, 1]} : vector<8x128xf32> to vector<8x32xf32>
    %95 = math.tanh %94 : vector<8x32xf32>
    %96 = arith.mulf %92, %47 : vector<8x32xf32>
    %97 = arith.mulf %91, %95 : vector<8x32xf32>
    %98 = arith.addf %96, %97 : vector<8x32xf32>
    %99 = math.tanh %98 : vector<8x32xf32>
    %100 = arith.mulf %93, %99 : vector<8x32xf32>
    %101 = vector.shape_cast %83 : vector<8x1xi1> to vector<8x1xi1>
    %102 = vector.broadcast %101 : vector<8x1xi1> to vector<8x32xi1>
    %103 = arith.select %102, %100, %44 : vector<8x32xi1>, vector<8x32xf32>
    %104 = vector.shape_cast %83 : vector<8x1xi1> to vector<8x1xi1>
    %105 = vector.broadcast %104 : vector<8x1xi1> to vector<8x32xi1>
    %106 = arith.select %105, %98, %47 : vector<8x32xi1>, vector<8x32xf32>
    %107 = tpu.concatenate %100, %72, %22 in 1 : vector<8x32xf32>, vector<8x32xf32>, vector<8x32xf32> -> vector<8x96xf32>
    %108 = tpu.concatenate %22, %22, %103 in 1 : vector<8x32xf32>, vector<8x32xf32>, vector<8x32xf32> -> vector<8x96xf32>
    %109 = tpu.concatenate %107, %108 in 0 : vector<8x96xf32>, vector<8x96xf32> -> vector<16x96xf32>
    %cst_25 = arith.constant dense<0.000000e+00> : vector<16x128xf32>
    %110 = tpu.matmul %109, %2, %cst_25 {dimension_numbers = #tpu.dot_dimension_numbers<[1], [0], [0], [1], [0, 0, 1, 1], [], []>} : vector<16x96xf32>, vector<96x128xf32>, vector<16x128xf32> -> vector<16x128xf32>
    %111 = vector.extract_strided_slice %110 {offsets = [0, 0], sizes = [8, 128], strides = [1, 1]} : vector<16x128xf32> to vector<8x128xf32>
    %112 = arith.addf %111, %7 : vector<8x128xf32>
    %113 = vector.extract_strided_slice %110 {offsets = [8, 0], sizes = [8, 128], strides = [1, 1]} : vector<16x128xf32> to vector<8x128xf32>
    %114 = arith.negf %112 : vector<8x128xf32>
    %115 = math.exp %114 : vector<8x128xf32>
    %cst_26 = arith.constant 1.000000e+00 : f32
    %116 = vector.broadcast %cst_26 : f32 to vector<8x128xf32>
    %117 = arith.addf %116, %115 : vector<8x128xf32>
    %118 = arith.divf %116, %117 : vector<8x128xf32>
    %119 = vector.extract_strided_slice %118 {offsets = [0, 0], sizes = [8, 32], strides = [1, 1]} : vector<8x128xf32> to vector<8x32xf32>
    %120 = vector.extract_strided_slice %118 {offsets = [0, 32], sizes = [8, 32], strides = [1, 1]} : vector<8x128xf32> to vector<8x32xf32>
    %121 = vector.extract_strided_slice %118 {offsets = [0, 96], sizes = [8, 32], strides = [1, 1]} : vector<8x128xf32> to vector<8x32xf32>
    %122 = vector.extract_strided_slice %112 {offsets = [0, 64], sizes = [8, 32], strides = [1, 1]} : vector<8x128xf32> to vector<8x32xf32>
    %123 = math.tanh %122 : vector<8x32xf32>
    %124 = arith.mulf %120, %75 : vector<8x32xf32>
    %125 = arith.mulf %119, %123 : vector<8x32xf32>
    %126 = arith.addf %124, %125 : vector<8x32xf32>
    %127 = math.tanh %126 : vector<8x32xf32>
    %128 = arith.mulf %121, %127 : vector<8x32xf32>
    %129 = vector.shape_cast %83 : vector<8x1xi1> to vector<8x1xi1>
    %130 = vector.broadcast %129 : vector<8x1xi1> to vector<8x32xi1>
    %131 = arith.select %130, %128, %72 : vector<8x32xi1>, vector<8x32xf32>
    %132 = vector.shape_cast %83 : vector<8x1xi1> to vector<8x1xi1>
    %133 = vector.broadcast %132 : vector<8x1xi1> to vector<8x32xi1>
    %134 = arith.select %133, %126, %75 : vector<8x32xi1>, vector<8x32xf32>
    %135 = vector.shape_cast %83 : vector<8x1xi1> to vector<8x1xi1>
    %136 = vector.broadcast %135 : vector<8x1xi1> to vector<8x32xi1>
    %137 = arith.select %136, %128, %22 : vector<8x32xi1>, vector<8x32xf32>
    %c1_27 = arith.constant 1 : index
    %c0_28 = arith.constant 0 : index
    %c0_29 = arith.constant 0 : index
    %138 = vector.load %arg5[%c1_27, %c0_28, %c0_29] : memref<8x8x32xf32, #tpu.memory_space<vmem>>, vector<1x8x32xf32>
    %139 = vector.shape_cast %138 : vector<1x8x32xf32> to vector<8x32xf32>
    %140 = vector.shape_cast %137 : vector<8x32xf32> to vector<1x8x32xf32>
    tpu.vector_store %arg5[%c1_27, %c0_28, %c0_29], %140 {strides = array<i32>} : memref<8x8x32xf32, #tpu.memory_space<vmem>>, vector<1x8x32xf32>,
    %c2_i32 = arith.constant 2 : i32
    %141 = vector.broadcast %c2_i32 : i32 to vector<8x1xi32>
    %142 = arith.cmpi sgt, %0, %141 : vector<8x1xi32>
    %143 = vector.extract_strided_slice %11 {offsets = [16, 0], sizes = [8, 128], strides = [1, 1]} : vector<64x128xf32> to vector<8x128xf32>
    %144 = arith.addf %143, %113 : vector<8x128xf32>
    %145 = arith.negf %144 : vector<8x128xf32>
    %146 = math.exp %145 : vector<8x128xf32>
    %cst_30 = arith.constant 1.000000e+00 : f32
    %147 = vector.broadcast %cst_30 : f32 to vector<8x128xf32>
    %148 = arith.addf %147, %146 : vector<8x128xf32>
    %149 = arith.divf %147, %148 : vector<8x128xf32>
    %150 = vector.extract_strided_slice %149 {offsets = [0, 0], sizes = [8, 32], strides = [1, 1]} : vector<8x128xf32> to vector<8x32xf32>
    %151 = vector.extract_strided_slice %149 {offsets = [0, 32], sizes = [8, 32], strides = [1, 1]} : vector<8x128xf32> to vector<8x32xf32>
    %152 = vector.extract_strided_slice %149 {offsets = [0, 96], sizes = [8, 32], strides = [1, 1]} : vector<8x128xf32> to vector<8x32xf32>
    %153 = vector.extract_strided_slice %144 {offsets = [0, 64], sizes = [8, 32], strides = [1, 1]} : vector<8x128xf32> to vector<8x32xf32>
    %154 = math.tanh %153 : vector<8x32xf32>
    %155 = arith.mulf %151, %106 : vector<8x32xf32>
    %156 = arith.mulf %150, %154 : vector<8x32xf32>
    %157 = arith.addf %155, %156 : vector<8x32xf32>
    %158 = math.tanh %157 : vector<8x32xf32>
    %159 = arith.mulf %152, %158 : vector<8x32xf32>
    %160 = vector.shape_cast %142 : vector<8x1xi1> to vector<8x1xi1>
    %161 = vector.broadcast %160 : vector<8x1xi1> to vector<8x32xi1>
    %162 = arith.select %161, %159, %103 : vector<8x32xi1>, vector<8x32xf32>
    %163 = vector.shape_cast %142 : vector<8x1xi1> to vector<8x1xi1>
    %164 = vector.broadcast %163 : vector<8x1xi1> to vector<8x32xi1>
    %165 = arith.select %164, %157, %106 : vector<8x32xi1>, vector<8x32xf32>
    %166 = tpu.concatenate %159, %131, %22 in 1 : vector<8x32xf32>, vector<8x32xf32>, vector<8x32xf32> -> vector<8x96xf32>
    %167 = tpu.concatenate %22, %22, %162 in 1 : vector<8x32xf32>, vector<8x32xf32>, vector<8x32xf32> -> vector<8x96xf32>
    %168 = tpu.concatenate %166, %167 in 0 : vector<8x96xf32>, vector<8x96xf32> -> vector<16x96xf32>
    %cst_31 = arith.constant dense<0.000000e+00> : vector<16x128xf32>
    %169 = tpu.matmul %168, %2, %cst_31 {dimension_numbers = #tpu.dot_dimension_numbers<[1], [0], [0], [1], [0, 0, 1, 1], [], []>} : vector<16x96xf32>, vector<96x128xf32>, vector<16x128xf32> -> vector<16x128xf32>
    %170 = vector.extract_strided_slice %169 {offsets = [0, 0], sizes = [8, 128], strides = [1, 1]} : vector<16x128xf32> to vector<8x128xf32>
    %171 = arith.addf %170, %7 : vector<8x128xf32>
    %172 = vector.extract_strided_slice %169 {offsets = [8, 0], sizes = [8, 128], strides = [1, 1]} : vector<16x128xf32> to vector<8x128xf32>
    %173 = arith.negf %171 : vector<8x128xf32>
    %174 = math.exp %173 : vector<8x128xf32>
    %cst_32 = arith.constant 1.000000e+00 : f32
    %175 = vector.broadcast %cst_32 : f32 to vector<8x128xf32>
    %176 = arith.addf %175, %174 : vector<8x128xf32>
    %177 = arith.divf %175, %176 : vector<8x128xf32>
    %178 = vector.extract_strided_slice %177 {offsets = [0, 0], sizes = [8, 32], strides = [1, 1]} : vector<8x128xf32> to vector<8x32xf32>
    %179 = vector.extract_strided_slice %177 {offsets = [0, 32], sizes = [8, 32], strides = [1, 1]} : vector<8x128xf32> to vector<8x32xf32>
    %180 = vector.extract_strided_slice %177 {offsets = [0, 96], sizes = [8, 32], strides = [1, 1]} : vector<8x128xf32> to vector<8x32xf32>
    %181 = vector.extract_strided_slice %171 {offsets = [0, 64], sizes = [8, 32], strides = [1, 1]} : vector<8x128xf32> to vector<8x32xf32>
    %182 = math.tanh %181 : vector<8x32xf32>
    %183 = arith.mulf %179, %134 : vector<8x32xf32>
    %184 = arith.mulf %178, %182 : vector<8x32xf32>
    %185 = arith.addf %183, %184 : vector<8x32xf32>
    %186 = math.tanh %185 : vector<8x32xf32>
    %187 = arith.mulf %180, %186 : vector<8x32xf32>
    %188 = vector.shape_cast %142 : vector<8x1xi1> to vector<8x1xi1>
    %189 = vector.broadcast %188 : vector<8x1xi1> to vector<8x32xi1>
    %190 = arith.select %189, %187, %131 : vector<8x32xi1>, vector<8x32xf32>
    %191 = vector.shape_cast %142 : vector<8x1xi1> to vector<8x1xi1>
    %192 = vector.broadcast %191 : vector<8x1xi1> to vector<8x32xi1>
    %193 = arith.select %192, %185, %134 : vector<8x32xi1>, vector<8x32xf32>
    %194 = vector.shape_cast %142 : vector<8x1xi1> to vector<8x1xi1>
    %195 = vector.broadcast %194 : vector<8x1xi1> to vector<8x32xi1>
    %196 = arith.select %195, %187, %22 : vector<8x32xi1>, vector<8x32xf32>
    %c2_33 = arith.constant 2 : index
    %c0_34 = arith.constant 0 : index
    %c0_35 = arith.constant 0 : index
    %197 = vector.load %arg5[%c2_33, %c0_34, %c0_35] : memref<8x8x32xf32, #tpu.memory_space<vmem>>, vector<1x8x32xf32>
    %198 = vector.shape_cast %197 : vector<1x8x32xf32> to vector<8x32xf32>
    %199 = vector.shape_cast %196 : vector<8x32xf32> to vector<1x8x32xf32>
    tpu.vector_store %arg5[%c2_33, %c0_34, %c0_35], %199 {strides = array<i32>} : memref<8x8x32xf32, #tpu.memory_space<vmem>>, vector<1x8x32xf32>,
    %c3_i32 = arith.constant 3 : i32
    %200 = vector.broadcast %c3_i32 : i32 to vector<8x1xi32>
    %201 = arith.cmpi sgt, %0, %200 : vector<8x1xi32>
    %202 = vector.extract_strided_slice %11 {offsets = [24, 0], sizes = [8, 128], strides = [1, 1]} : vector<64x128xf32> to vector<8x128xf32>
    %203 = arith.addf %202, %172 : vector<8x128xf32>
    %204 = arith.negf %203 : vector<8x128xf32>
    %205 = math.exp %204 : vector<8x128xf32>
    %cst_36 = arith.constant 1.000000e+00 : f32
    %206 = vector.broadcast %cst_36 : f32 to vector<8x128xf32>
    %207 = arith.addf %206, %205 : vector<8x128xf32>
    %208 = arith.divf %206, %207 : vector<8x128xf32>
    %209 = vector.extract_strided_slice %208 {offsets = [0, 0], sizes = [8, 32], strides = [1, 1]} : vector<8x128xf32> to vector<8x32xf32>
    %210 = vector.extract_strided_slice %208 {offsets = [0, 32], sizes = [8, 32], strides = [1, 1]} : vector<8x128xf32> to vector<8x32xf32>
    %211 = vector.extract_strided_slice %208 {offsets = [0, 96], sizes = [8, 32], strides = [1, 1]} : vector<8x128xf32> to vector<8x32xf32>
    %212 = vector.extract_strided_slice %203 {offsets = [0, 64], sizes = [8, 32], strides = [1, 1]} : vector<8x128xf32> to vector<8x32xf32>
    %213 = math.tanh %212 : vector<8x32xf32>
    %214 = arith.mulf %210, %165 : vector<8x32xf32>
    %215 = arith.mulf %209, %213 : vector<8x32xf32>
    %216 = arith.addf %214, %215 : vector<8x32xf32>
    %217 = math.tanh %216 : vector<8x32xf32>
    %218 = arith.mulf %211, %217 : vector<8x32xf32>
    %219 = vector.shape_cast %201 : vector<8x1xi1> to vector<8x1xi1>
    %220 = vector.broadcast %219 : vector<8x1xi1> to vector<8x32xi1>
    %221 = arith.select %220, %218, %162 : vector<8x32xi1>, vector<8x32xf32>
    %222 = vector.shape_cast %201 : vector<8x1xi1> to vector<8x1xi1>
    %223 = vector.broadcast %222 : vector<8x1xi1> to vector<8x32xi1>
    %224 = arith.select %223, %216, %165 : vector<8x32xi1>, vector<8x32xf32>
    %225 = tpu.concatenate %218, %190, %22 in 1 : vector<8x32xf32>, vector<8x32xf32>, vector<8x32xf32> -> vector<8x96xf32>
    %226 = tpu.concatenate %22, %22, %221 in 1 : vector<8x32xf32>, vector<8x32xf32>, vector<8x32xf32> -> vector<8x96xf32>
    %227 = tpu.concatenate %225, %226 in 0 : vector<8x96xf32>, vector<8x96xf32> -> vector<16x96xf32>
    %cst_37 = arith.constant dense<0.000000e+00> : vector<16x128xf32>
    %228 = tpu.matmul %227, %2, %cst_37 {dimension_numbers = #tpu.dot_dimension_numbers<[1], [0], [0], [1], [0, 0, 1, 1], [], []>} : vector<16x96xf32>, vector<96x128xf32>, vector<16x128xf32> -> vector<16x128xf32>
    %229 = vector.extract_strided_slice %228 {offsets = [0, 0], sizes = [8, 128], strides = [1, 1]} : vector<16x128xf32> to vector<8x128xf32>
    %230 = arith.addf %229, %7 : vector<8x128xf32>
    %231 = vector.extract_strided_slice %228 {offsets = [8, 0], sizes = [8, 128], strides = [1, 1]} : vector<16x128xf32> to vector<8x128xf32>
    %232 = arith.negf %230 : vector<8x128xf32>
    %233 = math.exp %232 : vector<8x128xf32>
    %cst_38 = arith.constant 1.000000e+00 : f32
    %234 = vector.broadcast %cst_38 : f32 to vector<8x128xf32>
    %235 = arith.addf %234, %233 : vector<8x128xf32>
    %236 = arith.divf %234, %235 : vector<8x128xf32>
    %237 = vector.extract_strided_slice %236 {offsets = [0, 0], sizes = [8, 32], strides = [1, 1]} : vector<8x128xf32> to vector<8x32xf32>
    %238 = vector.extract_strided_slice %236 {offsets = [0, 32], sizes = [8, 32], strides = [1, 1]} : vector<8x128xf32> to vector<8x32xf32>
    %239 = vector.extract_strided_slice %236 {offsets = [0, 96], sizes = [8, 32], strides = [1, 1]} : vector<8x128xf32> to vector<8x32xf32>
    %240 = vector.extract_strided_slice %230 {offsets = [0, 64], sizes = [8, 32], strides = [1, 1]} : vector<8x128xf32> to vector<8x32xf32>
    %241 = math.tanh %240 : vector<8x32xf32>
    %242 = arith.mulf %238, %193 : vector<8x32xf32>
    %243 = arith.mulf %237, %241 : vector<8x32xf32>
    %244 = arith.addf %242, %243 : vector<8x32xf32>
    %245 = math.tanh %244 : vector<8x32xf32>
    %246 = arith.mulf %239, %245 : vector<8x32xf32>
    %247 = vector.shape_cast %201 : vector<8x1xi1> to vector<8x1xi1>
    %248 = vector.broadcast %247 : vector<8x1xi1> to vector<8x32xi1>
    %249 = arith.select %248, %246, %190 : vector<8x32xi1>, vector<8x32xf32>
    %250 = vector.shape_cast %201 : vector<8x1xi1> to vector<8x1xi1>
    %251 = vector.broadcast %250 : vector<8x1xi1> to vector<8x32xi1>
    %252 = arith.select %251, %244, %193 : vector<8x32xi1>, vector<8x32xf32>
    %253 = vector.shape_cast %201 : vector<8x1xi1> to vector<8x1xi1>
    %254 = vector.broadcast %253 : vector<8x1xi1> to vector<8x32xi1>
    %255 = arith.select %254, %246, %22 : vector<8x32xi1>, vector<8x32xf32>
    %c3_39 = arith.constant 3 : index
    %c0_40 = arith.constant 0 : index
    %c0_41 = arith.constant 0 : index
    %256 = vector.load %arg5[%c3_39, %c0_40, %c0_41] : memref<8x8x32xf32, #tpu.memory_space<vmem>>, vector<1x8x32xf32>
    %257 = vector.shape_cast %256 : vector<1x8x32xf32> to vector<8x32xf32>
    %258 = vector.shape_cast %255 : vector<8x32xf32> to vector<1x8x32xf32>
    tpu.vector_store %arg5[%c3_39, %c0_40, %c0_41], %258 {strides = array<i32>} : memref<8x8x32xf32, #tpu.memory_space<vmem>>, vector<1x8x32xf32>,
    %c4_i32 = arith.constant 4 : i32
    %259 = vector.broadcast %c4_i32 : i32 to vector<8x1xi32>
    %260 = arith.cmpi sgt, %0, %259 : vector<8x1xi32>
    %261 = vector.extract_strided_slice %11 {offsets = [32, 0], sizes = [8, 128], strides = [1, 1]} : vector<64x128xf32> to vector<8x128xf32>
    %262 = arith.addf %261, %231 : vector<8x128xf32>
    %263 = arith.negf %262 : vector<8x128xf32>
    %264 = math.exp %263 : vector<8x128xf32>
    %cst_42 = arith.constant 1.000000e+00 : f32
    %265 = vector.broadcast %cst_42 : f32 to vector<8x128xf32>
    %266 = arith.addf %265, %264 : vector<8x128xf32>
    %267 = arith.divf %265, %266 : vector<8x128xf32>
    %268 = vector.extract_strided_slice %267 {offsets = [0, 0], sizes = [8, 32], strides = [1, 1]} : vector<8x128xf32> to vector<8x32xf32>
    %269 = vector.extract_strided_slice %267 {offsets = [0, 32], sizes = [8, 32], strides = [1, 1]} : vector<8x128xf32> to vector<8x32xf32>
    %270 = vector.extract_strided_slice %267 {offsets = [0, 96], sizes = [8, 32], strides = [1, 1]} : vector<8x128xf32> to vector<8x32xf32>
    %271 = vector.extract_strided_slice %262 {offsets = [0, 64], sizes = [8, 32], strides = [1, 1]} : vector<8x128xf32> to vector<8x32xf32>
    %272 = math.tanh %271 : vector<8x32xf32>
    %273 = arith.mulf %269, %224 : vector<8x32xf32>
    %274 = arith.mulf %268, %272 : vector<8x32xf32>
    %275 = arith.addf %273, %274 : vector<8x32xf32>
    %276 = math.tanh %275 : vector<8x32xf32>
    %277 = arith.mulf %270, %276 : vector<8x32xf32>
    %278 = vector.shape_cast %260 : vector<8x1xi1> to vector<8x1xi1>
    %279 = vector.broadcast %278 : vector<8x1xi1> to vector<8x32xi1>
    %280 = arith.select %279, %277, %221 : vector<8x32xi1>, vector<8x32xf32>
    %281 = vector.shape_cast %260 : vector<8x1xi1> to vector<8x1xi1>
    %282 = vector.broadcast %281 : vector<8x1xi1> to vector<8x32xi1>
    %283 = arith.select %282, %275, %224 : vector<8x32xi1>, vector<8x32xf32>
    %284 = tpu.concatenate %277, %249, %22 in 1 : vector<8x32xf32>, vector<8x32xf32>, vector<8x32xf32> -> vector<8x96xf32>
    %285 = tpu.concatenate %22, %22, %280 in 1 : vector<8x32xf32>, vector<8x32xf32>, vector<8x32xf32> -> vector<8x96xf32>
    %286 = tpu.concatenate %284, %285 in 0 : vector<8x96xf32>, vector<8x96xf32> -> vector<16x96xf32>
    %cst_43 = arith.constant dense<0.000000e+00> : vector<16x128xf32>
    %287 = tpu.matmul %286, %2, %cst_43 {dimension_numbers = #tpu.dot_dimension_numbers<[1], [0], [0], [1], [0, 0, 1, 1], [], []>} : vector<16x96xf32>, vector<96x128xf32>, vector<16x128xf32> -> vector<16x128xf32>
    %288 = vector.extract_strided_slice %287 {offsets = [0, 0], sizes = [8, 128], strides = [1, 1]} : vector<16x128xf32> to vector<8x128xf32>
    %289 = arith.addf %288, %7 : vector<8x128xf32>
    %290 = vector.extract_strided_slice %287 {offsets = [8, 0], sizes = [8, 128], strides = [1, 1]} : vector<16x128xf32> to vector<8x128xf32>
    %291 = arith.negf %289 : vector<8x128xf32>
    %292 = math.exp %291 : vector<8x128xf32>
    %cst_44 = arith.constant 1.000000e+00 : f32
    %293 = vector.broadcast %cst_44 : f32 to vector<8x128xf32>
    %294 = arith.addf %293, %292 : vector<8x128xf32>
    %295 = arith.divf %293, %294 : vector<8x128xf32>
    %296 = vector.extract_strided_slice %295 {offsets = [0, 0], sizes = [8, 32], strides = [1, 1]} : vector<8x128xf32> to vector<8x32xf32>
    %297 = vector.extract_strided_slice %295 {offsets = [0, 32], sizes = [8, 32], strides = [1, 1]} : vector<8x128xf32> to vector<8x32xf32>
    %298 = vector.extract_strided_slice %295 {offsets = [0, 96], sizes = [8, 32], strides = [1, 1]} : vector<8x128xf32> to vector<8x32xf32>
    %299 = vector.extract_strided_slice %289 {offsets = [0, 64], sizes = [8, 32], strides = [1, 1]} : vector<8x128xf32> to vector<8x32xf32>
    %300 = math.tanh %299 : vector<8x32xf32>
    %301 = arith.mulf %297, %252 : vector<8x32xf32>
    %302 = arith.mulf %296, %300 : vector<8x32xf32>
    %303 = arith.addf %301, %302 : vector<8x32xf32>
    %304 = math.tanh %303 : vector<8x32xf32>
    %305 = arith.mulf %298, %304 : vector<8x32xf32>
    %306 = vector.shape_cast %260 : vector<8x1xi1> to vector<8x1xi1>
    %307 = vector.broadcast %306 : vector<8x1xi1> to vector<8x32xi1>
    %308 = arith.select %307, %305, %249 : vector<8x32xi1>, vector<8x32xf32>
    %309 = vector.shape_cast %260 : vector<8x1xi1> to vector<8x1xi1>
    %310 = vector.broadcast %309 : vector<8x1xi1> to vector<8x32xi1>
    %311 = arith.select %310, %303, %252 : vector<8x32xi1>, vector<8x32xf32>
    %312 = vector.shape_cast %260 : vector<8x1xi1> to vector<8x1xi1>
    %313 = vector.broadcast %312 : vector<8x1xi1> to vector<8x32xi1>
    %314 = arith.select %313, %305, %22 : vector<8x32xi1>, vector<8x32xf32>
    %c4 = arith.constant 4 : index
    %c0_45 = arith.constant 0 : index
    %c0_46 = arith.constant 0 : index
    %315 = vector.load %arg5[%c4, %c0_45, %c0_46] : memref<8x8x32xf32, #tpu.memory_space<vmem>>, vector<1x8x32xf32>
    %316 = vector.shape_cast %315 : vector<1x8x32xf32> to vector<8x32xf32>
    %317 = vector.shape_cast %314 : vector<8x32xf32> to vector<1x8x32xf32>
    tpu.vector_store %arg5[%c4, %c0_45, %c0_46], %317 {strides = array<i32>} : memref<8x8x32xf32, #tpu.memory_space<vmem>>, vector<1x8x32xf32>,
    %c5_i32 = arith.constant 5 : i32
    %318 = vector.broadcast %c5_i32 : i32 to vector<8x1xi32>
    %319 = arith.cmpi sgt, %0, %318 : vector<8x1xi32>
    %320 = vector.extract_strided_slice %11 {offsets = [40, 0], sizes = [8, 128], strides = [1, 1]} : vector<64x128xf32> to vector<8x128xf32>
    %321 = arith.addf %320, %290 : vector<8x128xf32>
    %322 = arith.negf %321 : vector<8x128xf32>
    %323 = math.exp %322 : vector<8x128xf32>
    %cst_47 = arith.constant 1.000000e+00 : f32
    %324 = vector.broadcast %cst_47 : f32 to vector<8x128xf32>
    %325 = arith.addf %324, %323 : vector<8x128xf32>
    %326 = arith.divf %324, %325 : vector<8x128xf32>
    %327 = vector.extract_strided_slice %326 {offsets = [0, 0], sizes = [8, 32], strides = [1, 1]} : vector<8x128xf32> to vector<8x32xf32>
    %328 = vector.extract_strided_slice %326 {offsets = [0, 32], sizes = [8, 32], strides = [1, 1]} : vector<8x128xf32> to vector<8x32xf32>
    %329 = vector.extract_strided_slice %326 {offsets = [0, 96], sizes = [8, 32], strides = [1, 1]} : vector<8x128xf32> to vector<8x32xf32>
    %330 = vector.extract_strided_slice %321 {offsets = [0, 64], sizes = [8, 32], strides = [1, 1]} : vector<8x128xf32> to vector<8x32xf32>
    %331 = math.tanh %330 : vector<8x32xf32>
    %332 = arith.mulf %328, %283 : vector<8x32xf32>
    %333 = arith.mulf %327, %331 : vector<8x32xf32>
    %334 = arith.addf %332, %333 : vector<8x32xf32>
    %335 = math.tanh %334 : vector<8x32xf32>
    %336 = arith.mulf %329, %335 : vector<8x32xf32>
    %337 = vector.shape_cast %319 : vector<8x1xi1> to vector<8x1xi1>
    %338 = vector.broadcast %337 : vector<8x1xi1> to vector<8x32xi1>
    %339 = arith.select %338, %336, %280 : vector<8x32xi1>, vector<8x32xf32>
    %340 = vector.shape_cast %319 : vector<8x1xi1> to vector<8x1xi1>
    %341 = vector.broadcast %340 : vector<8x1xi1> to vector<8x32xi1>
    %342 = arith.select %341, %334, %283 : vector<8x32xi1>, vector<8x32xf32>
    %343 = tpu.concatenate %336, %308, %22 in 1 : vector<8x32xf32>, vector<8x32xf32>, vector<8x32xf32> -> vector<8x96xf32>
    %344 = tpu.concatenate %22, %22, %339 in 1 : vector<8x32xf32>, vector<8x32xf32>, vector<8x32xf32> -> vector<8x96xf32>
    %345 = tpu.concatenate %343, %344 in 0 : vector<8x96xf32>, vector<8x96xf32> -> vector<16x96xf32>
    %cst_48 = arith.constant dense<0.000000e+00> : vector<16x128xf32>
    %346 = tpu.matmul %345, %2, %cst_48 {dimension_numbers = #tpu.dot_dimension_numbers<[1], [0], [0], [1], [0, 0, 1, 1], [], []>} : vector<16x96xf32>, vector<96x128xf32>, vector<16x128xf32> -> vector<16x128xf32>
    %347 = vector.extract_strided_slice %346 {offsets = [0, 0], sizes = [8, 128], strides = [1, 1]} : vector<16x128xf32> to vector<8x128xf32>
    %348 = arith.addf %347, %7 : vector<8x128xf32>
    %349 = vector.extract_strided_slice %346 {offsets = [8, 0], sizes = [8, 128], strides = [1, 1]} : vector<16x128xf32> to vector<8x128xf32>
    %350 = arith.negf %348 : vector<8x128xf32>
    %351 = math.exp %350 : vector<8x128xf32>
    %cst_49 = arith.constant 1.000000e+00 : f32
    %352 = vector.broadcast %cst_49 : f32 to vector<8x128xf32>
    %353 = arith.addf %352, %351 : vector<8x128xf32>
    %354 = arith.divf %352, %353 : vector<8x128xf32>
    %355 = vector.extract_strided_slice %354 {offsets = [0, 0], sizes = [8, 32], strides = [1, 1]} : vector<8x128xf32> to vector<8x32xf32>
    %356 = vector.extract_strided_slice %354 {offsets = [0, 32], sizes = [8, 32], strides = [1, 1]} : vector<8x128xf32> to vector<8x32xf32>
    %357 = vector.extract_strided_slice %354 {offsets = [0, 96], sizes = [8, 32], strides = [1, 1]} : vector<8x128xf32> to vector<8x32xf32>
    %358 = vector.extract_strided_slice %348 {offsets = [0, 64], sizes = [8, 32], strides = [1, 1]} : vector<8x128xf32> to vector<8x32xf32>
    %359 = math.tanh %358 : vector<8x32xf32>
    %360 = arith.mulf %356, %311 : vector<8x32xf32>
    %361 = arith.mulf %355, %359 : vector<8x32xf32>
    %362 = arith.addf %360, %361 : vector<8x32xf32>
    %363 = math.tanh %362 : vector<8x32xf32>
    %364 = arith.mulf %357, %363 : vector<8x32xf32>
    %365 = vector.shape_cast %319 : vector<8x1xi1> to vector<8x1xi1>
    %366 = vector.broadcast %365 : vector<8x1xi1> to vector<8x32xi1>
    %367 = arith.select %366, %364, %308 : vector<8x32xi1>, vector<8x32xf32>
    %368 = vector.shape_cast %319 : vector<8x1xi1> to vector<8x1xi1>
    %369 = vector.broadcast %368 : vector<8x1xi1> to vector<8x32xi1>
    %370 = arith.select %369, %362, %311 : vector<8x32xi1>, vector<8x32xf32>
    %371 = vector.shape_cast %319 : vector<8x1xi1> to vector<8x1xi1>
    %372 = vector.broadcast %371 : vector<8x1xi1> to vector<8x32xi1>
    %373 = arith.select %372, %364, %22 : vector<8x32xi1>, vector<8x32xf32>
    %c5 = arith.constant 5 : index
    %c0_50 = arith.constant 0 : index
    %c0_51 = arith.constant 0 : index
    %374 = vector.load %arg5[%c5, %c0_50, %c0_51] : memref<8x8x32xf32, #tpu.memory_space<vmem>>, vector<1x8x32xf32>
    %375 = vector.shape_cast %374 : vector<1x8x32xf32> to vector<8x32xf32>
    %376 = vector.shape_cast %373 : vector<8x32xf32> to vector<1x8x32xf32>
    tpu.vector_store %arg5[%c5, %c0_50, %c0_51], %376 {strides = array<i32>} : memref<8x8x32xf32, #tpu.memory_space<vmem>>, vector<1x8x32xf32>,
    %c6_i32 = arith.constant 6 : i32
    %377 = vector.broadcast %c6_i32 : i32 to vector<8x1xi32>
    %378 = arith.cmpi sgt, %0, %377 : vector<8x1xi32>
    %379 = vector.extract_strided_slice %11 {offsets = [48, 0], sizes = [8, 128], strides = [1, 1]} : vector<64x128xf32> to vector<8x128xf32>
    %380 = arith.addf %379, %349 : vector<8x128xf32>
    %381 = arith.negf %380 : vector<8x128xf32>
    %382 = math.exp %381 : vector<8x128xf32>
    %cst_52 = arith.constant 1.000000e+00 : f32
    %383 = vector.broadcast %cst_52 : f32 to vector<8x128xf32>
    %384 = arith.addf %383, %382 : vector<8x128xf32>
    %385 = arith.divf %383, %384 : vector<8x128xf32>
    %386 = vector.extract_strided_slice %385 {offsets = [0, 0], sizes = [8, 32], strides = [1, 1]} : vector<8x128xf32> to vector<8x32xf32>
    %387 = vector.extract_strided_slice %385 {offsets = [0, 32], sizes = [8, 32], strides = [1, 1]} : vector<8x128xf32> to vector<8x32xf32>
    %388 = vector.extract_strided_slice %385 {offsets = [0, 96], sizes = [8, 32], strides = [1, 1]} : vector<8x128xf32> to vector<8x32xf32>
    %389 = vector.extract_strided_slice %380 {offsets = [0, 64], sizes = [8, 32], strides = [1, 1]} : vector<8x128xf32> to vector<8x32xf32>
    %390 = math.tanh %389 : vector<8x32xf32>
    %391 = arith.mulf %387, %342 : vector<8x32xf32>
    %392 = arith.mulf %386, %390 : vector<8x32xf32>
    %393 = arith.addf %391, %392 : vector<8x32xf32>
    %394 = math.tanh %393 : vector<8x32xf32>
    %395 = arith.mulf %388, %394 : vector<8x32xf32>
    %396 = vector.shape_cast %378 : vector<8x1xi1> to vector<8x1xi1>
    %397 = vector.broadcast %396 : vector<8x1xi1> to vector<8x32xi1>
    %398 = arith.select %397, %395, %339 : vector<8x32xi1>, vector<8x32xf32>
    %399 = vector.shape_cast %378 : vector<8x1xi1> to vector<8x1xi1>
    %400 = vector.broadcast %399 : vector<8x1xi1> to vector<8x32xi1>
    %401 = arith.select %400, %393, %342 : vector<8x32xi1>, vector<8x32xf32>
    %402 = tpu.concatenate %395, %367, %22 in 1 : vector<8x32xf32>, vector<8x32xf32>, vector<8x32xf32> -> vector<8x96xf32>
    %403 = tpu.concatenate %22, %22, %398 in 1 : vector<8x32xf32>, vector<8x32xf32>, vector<8x32xf32> -> vector<8x96xf32>
    %404 = tpu.concatenate %402, %403 in 0 : vector<8x96xf32>, vector<8x96xf32> -> vector<16x96xf32>
    %cst_53 = arith.constant dense<0.000000e+00> : vector<16x128xf32>
    %405 = tpu.matmul %404, %2, %cst_53 {dimension_numbers = #tpu.dot_dimension_numbers<[1], [0], [0], [1], [0, 0, 1, 1], [], []>} : vector<16x96xf32>, vector<96x128xf32>, vector<16x128xf32> -> vector<16x128xf32>
    %406 = vector.extract_strided_slice %405 {offsets = [0, 0], sizes = [8, 128], strides = [1, 1]} : vector<16x128xf32> to vector<8x128xf32>
    %407 = arith.addf %406, %7 : vector<8x128xf32>
    %408 = vector.extract_strided_slice %405 {offsets = [8, 0], sizes = [8, 128], strides = [1, 1]} : vector<16x128xf32> to vector<8x128xf32>
    %409 = arith.negf %407 : vector<8x128xf32>
    %410 = math.exp %409 : vector<8x128xf32>
    %cst_54 = arith.constant 1.000000e+00 : f32
    %411 = vector.broadcast %cst_54 : f32 to vector<8x128xf32>
    %412 = arith.addf %411, %410 : vector<8x128xf32>
    %413 = arith.divf %411, %412 : vector<8x128xf32>
    %414 = vector.extract_strided_slice %413 {offsets = [0, 0], sizes = [8, 32], strides = [1, 1]} : vector<8x128xf32> to vector<8x32xf32>
    %415 = vector.extract_strided_slice %413 {offsets = [0, 32], sizes = [8, 32], strides = [1, 1]} : vector<8x128xf32> to vector<8x32xf32>
    %416 = vector.extract_strided_slice %413 {offsets = [0, 96], sizes = [8, 32], strides = [1, 1]} : vector<8x128xf32> to vector<8x32xf32>
    %417 = vector.extract_strided_slice %407 {offsets = [0, 64], sizes = [8, 32], strides = [1, 1]} : vector<8x128xf32> to vector<8x32xf32>
    %418 = math.tanh %417 : vector<8x32xf32>
    %419 = arith.mulf %415, %370 : vector<8x32xf32>
    %420 = arith.mulf %414, %418 : vector<8x32xf32>
    %421 = arith.addf %419, %420 : vector<8x32xf32>
    %422 = math.tanh %421 : vector<8x32xf32>
    %423 = arith.mulf %416, %422 : vector<8x32xf32>
    %424 = vector.shape_cast %378 : vector<8x1xi1> to vector<8x1xi1>
    %425 = vector.broadcast %424 : vector<8x1xi1> to vector<8x32xi1>
    %426 = arith.select %425, %423, %367 : vector<8x32xi1>, vector<8x32xf32>
    %427 = vector.shape_cast %378 : vector<8x1xi1> to vector<8x1xi1>
    %428 = vector.broadcast %427 : vector<8x1xi1> to vector<8x32xi1>
    %429 = arith.select %428, %421, %370 : vector<8x32xi1>, vector<8x32xf32>
    %430 = vector.shape_cast %378 : vector<8x1xi1> to vector<8x1xi1>
    %431 = vector.broadcast %430 : vector<8x1xi1> to vector<8x32xi1>
    %432 = arith.select %431, %423, %22 : vector<8x32xi1>, vector<8x32xf32>
    %c6 = arith.constant 6 : index
    %c0_55 = arith.constant 0 : index
    %c0_56 = arith.constant 0 : index
    %433 = vector.load %arg5[%c6, %c0_55, %c0_56] : memref<8x8x32xf32, #tpu.memory_space<vmem>>, vector<1x8x32xf32>
    %434 = vector.shape_cast %433 : vector<1x8x32xf32> to vector<8x32xf32>
    %435 = vector.shape_cast %432 : vector<8x32xf32> to vector<1x8x32xf32>
    tpu.vector_store %arg5[%c6, %c0_55, %c0_56], %435 {strides = array<i32>} : memref<8x8x32xf32, #tpu.memory_space<vmem>>, vector<1x8x32xf32>,
    %c7_i32 = arith.constant 7 : i32
    %436 = vector.broadcast %c7_i32 : i32 to vector<8x1xi32>
    %437 = arith.cmpi sgt, %0, %436 : vector<8x1xi32>
    %438 = vector.extract_strided_slice %11 {offsets = [56, 0], sizes = [8, 128], strides = [1, 1]} : vector<64x128xf32> to vector<8x128xf32>
    %439 = arith.addf %438, %408 : vector<8x128xf32>
    %440 = arith.negf %439 : vector<8x128xf32>
    %441 = math.exp %440 : vector<8x128xf32>
    %cst_57 = arith.constant 1.000000e+00 : f32
    %442 = vector.broadcast %cst_57 : f32 to vector<8x128xf32>
    %443 = arith.addf %442, %441 : vector<8x128xf32>
    %444 = arith.divf %442, %443 : vector<8x128xf32>
    %445 = vector.extract_strided_slice %444 {offsets = [0, 0], sizes = [8, 32], strides = [1, 1]} : vector<8x128xf32> to vector<8x32xf32>
    %446 = vector.extract_strided_slice %444 {offsets = [0, 32], sizes = [8, 32], strides = [1, 1]} : vector<8x128xf32> to vector<8x32xf32>
    %447 = vector.extract_strided_slice %444 {offsets = [0, 96], sizes = [8, 32], strides = [1, 1]} : vector<8x128xf32> to vector<8x32xf32>
    %448 = vector.extract_strided_slice %439 {offsets = [0, 64], sizes = [8, 32], strides = [1, 1]} : vector<8x128xf32> to vector<8x32xf32>
    %449 = math.tanh %448 : vector<8x32xf32>
    %450 = arith.mulf %446, %401 : vector<8x32xf32>
    %451 = arith.mulf %445, %449 : vector<8x32xf32>
    %452 = arith.addf %450, %451 : vector<8x32xf32>
    %453 = math.tanh %452 : vector<8x32xf32>
    %454 = arith.mulf %447, %453 : vector<8x32xf32>
    %455 = vector.shape_cast %437 : vector<8x1xi1> to vector<8x1xi1>
    %456 = vector.broadcast %455 : vector<8x1xi1> to vector<8x32xi1>
    %457 = arith.select %456, %454, %398 : vector<8x32xi1>, vector<8x32xf32>
    %458 = vector.shape_cast %437 : vector<8x1xi1> to vector<8x1xi1>
    %459 = vector.broadcast %458 : vector<8x1xi1> to vector<8x32xi1>
    %460 = arith.select %459, %452, %401 : vector<8x32xi1>, vector<8x32xf32>
    %461 = tpu.concatenate %454, %426, %22 in 1 : vector<8x32xf32>, vector<8x32xf32>, vector<8x32xf32> -> vector<8x96xf32>
    %462 = tpu.concatenate %22, %22, %457 in 1 : vector<8x32xf32>, vector<8x32xf32>, vector<8x32xf32> -> vector<8x96xf32>
    %463 = tpu.concatenate %461, %462 in 0 : vector<8x96xf32>, vector<8x96xf32> -> vector<16x96xf32>
    %cst_58 = arith.constant dense<0.000000e+00> : vector<16x128xf32>
    %464 = tpu.matmul %463, %2, %cst_58 {dimension_numbers = #tpu.dot_dimension_numbers<[1], [0], [0], [1], [0, 0, 1, 1], [], []>} : vector<16x96xf32>, vector<96x128xf32>, vector<16x128xf32> -> vector<16x128xf32>
    %465 = vector.extract_strided_slice %464 {offsets = [0, 0], sizes = [8, 128], strides = [1, 1]} : vector<16x128xf32> to vector<8x128xf32>
    %466 = arith.addf %465, %7 : vector<8x128xf32>
    %467 = arith.negf %466 : vector<8x128xf32>
    %468 = math.exp %467 : vector<8x128xf32>
    %cst_59 = arith.constant 1.000000e+00 : f32
    %469 = vector.broadcast %cst_59 : f32 to vector<8x128xf32>
    %470 = arith.addf %469, %468 : vector<8x128xf32>
    %471 = arith.divf %469, %470 : vector<8x128xf32>
    %472 = vector.extract_strided_slice %471 {offsets = [0, 0], sizes = [8, 32], strides = [1, 1]} : vector<8x128xf32> to vector<8x32xf32>
    %473 = vector.extract_strided_slice %471 {offsets = [0, 32], sizes = [8, 32], strides = [1, 1]} : vector<8x128xf32> to vector<8x32xf32>
    %474 = vector.extract_strided_slice %471 {offsets = [0, 96], sizes = [8, 32], strides = [1, 1]} : vector<8x128xf32> to vector<8x32xf32>
    %475 = vector.extract_strided_slice %466 {offsets = [0, 64], sizes = [8, 32], strides = [1, 1]} : vector<8x128xf32> to vector<8x32xf32>
    %476 = math.tanh %475 : vector<8x32xf32>
    %477 = arith.mulf %473, %429 : vector<8x32xf32>
    %478 = arith.mulf %472, %476 : vector<8x32xf32>
    %479 = arith.addf %477, %478 : vector<8x32xf32>
    %480 = math.tanh %479 : vector<8x32xf32>
    %481 = arith.mulf %474, %480 : vector<8x32xf32>
    %482 = vector.shape_cast %437 : vector<8x1xi1> to vector<8x1xi1>
    %483 = vector.broadcast %482 : vector<8x1xi1> to vector<8x32xi1>
    %484 = arith.select %483, %481, %426 : vector<8x32xi1>, vector<8x32xf32>
    %485 = vector.shape_cast %437 : vector<8x1xi1> to vector<8x1xi1>
    %486 = vector.broadcast %485 : vector<8x1xi1> to vector<8x32xi1>
    %487 = arith.select %486, %479, %429 : vector<8x32xi1>, vector<8x32xf32>
    %488 = vector.shape_cast %437 : vector<8x1xi1> to vector<8x1xi1>
    %489 = vector.broadcast %488 : vector<8x1xi1> to vector<8x32xi1>
    %490 = arith.select %489, %481, %22 : vector<8x32xi1>, vector<8x32xf32>
    %c7 = arith.constant 7 : index
    %c0_60 = arith.constant 0 : index
    %c0_61 = arith.constant 0 : index
    %491 = vector.load %arg5[%c7, %c0_60, %c0_61] : memref<8x8x32xf32, #tpu.memory_space<vmem>>, vector<1x8x32xf32>
    %492 = vector.shape_cast %491 : vector<1x8x32xf32> to vector<8x32xf32>
    %493 = vector.shape_cast %490 : vector<8x32xf32> to vector<1x8x32xf32>
    tpu.vector_store %arg5[%c7, %c0_60, %c0_61], %493 {strides = array<i32>} : memref<8x8x32xf32, #tpu.memory_space<vmem>>, vector<1x8x32xf32>,
    %c0_62 = arith.constant 0 : index
    %c0_63 = arith.constant 0 : index
    %c0_64 = arith.constant 0 : index
    %494 = vector.load %arg6[%c0_62, %c0_63, %c0_64] : memref<4x8x32xf32, #tpu.memory_space<vmem>>, vector<1x8x32xf32>
    %495 = vector.shape_cast %494 : vector<1x8x32xf32> to vector<8x32xf32>
    %496 = vector.shape_cast %457 : vector<8x32xf32> to vector<1x8x32xf32>
    tpu.vector_store %arg6[%c0_62, %c0_63, %c0_64], %496 {strides = array<i32>} : memref<4x8x32xf32, #tpu.memory_space<vmem>>, vector<1x8x32xf32>,
    %c1_65 = arith.constant 1 : index
    %c0_66 = arith.constant 0 : index
    %c0_67 = arith.constant 0 : index
    %497 = vector.load %arg6[%c1_65, %c0_66, %c0_67] : memref<4x8x32xf32, #tpu.memory_space<vmem>>, vector<1x8x32xf32>
    %498 = vector.shape_cast %497 : vector<1x8x32xf32> to vector<8x32xf32>
    %499 = vector.shape_cast %484 : vector<8x32xf32> to vector<1x8x32xf32>
    tpu.vector_store %arg6[%c1_65, %c0_66, %c0_67], %499 {strides = array<i32>} : memref<4x8x32xf32, #tpu.memory_space<vmem>>, vector<1x8x32xf32>,
    %c2_68 = arith.constant 2 : index
    %c0_69 = arith.constant 0 : index
    %c0_70 = arith.constant 0 : index
    %500 = vector.load %arg6[%c2_68, %c0_69, %c0_70] : memref<4x8x32xf32, #tpu.memory_space<vmem>>, vector<1x8x32xf32>
    %501 = vector.shape_cast %500 : vector<1x8x32xf32> to vector<8x32xf32>
    %502 = vector.shape_cast %460 : vector<8x32xf32> to vector<1x8x32xf32>
    tpu.vector_store %arg6[%c2_68, %c0_69, %c0_70], %502 {strides = array<i32>} : memref<4x8x32xf32, #tpu.memory_space<vmem>>, vector<1x8x32xf32>,
    %c3_71 = arith.constant 3 : index
    %c0_72 = arith.constant 0 : index
    %c0_73 = arith.constant 0 : index
    %503 = vector.load %arg6[%c3_71, %c0_72, %c0_73] : memref<4x8x32xf32, #tpu.memory_space<vmem>>, vector<1x8x32xf32>
    %504 = vector.shape_cast %503 : vector<1x8x32xf32> to vector<8x32xf32>
    %505 = vector.shape_cast %487 : vector<8x32xf32> to vector<1x8x32xf32>
    tpu.vector_store %arg6[%c3_71, %c0_72, %c0_73], %505 {strides = array<i32>} : memref<4x8x32xf32, #tpu.memory_space<vmem>>, vector<1x8x32xf32>,
    return
  }
  func.func @transform_0(%arg0: i32) -> (i32, i32) {
    %c0_i32 = arith.constant 0 : i32
    %c0_i32_0 = arith.constant 0 : i32
    %c0_i32_1 = arith.constant 0 : i32
    return %c0_i32, %c0_i32_0 : i32, i32
  }
  func.func @transform_1(%arg0: i32) -> (i32, i32) {
    %c0_i32 = arith.constant 0 : i32
    %c0_i32_0 = arith.constant 0 : i32
    %c0_i32_1 = arith.constant 0 : i32
    return %c0_i32, %c0_i32_0 : i32, i32
  }
  func.func @transform_2(%arg0: i32) -> (i32, i32, i32) {
    %c0_i32 = arith.constant 0 : i32
    %c0_i32_0 = arith.constant 0 : i32
    %c0_i32_1 = arith.constant 0 : i32
    %c0_i32_2 = arith.constant 0 : i32
    return %c0_i32, %c0_i32_0, %c0_i32_1 : i32, i32, i32
  }
  func.func @transform_3(%arg0: i32) -> (i32, i32) {
    %c0_i32 = arith.constant 0 : i32
    %c0_i32_0 = arith.constant 0 : i32
    %c0_i32_1 = arith.constant 0 : i32
    return %c0_i32, %c0_i32_0 : i32, i32
  }
  func.func @transform_4(%arg0: i32) -> (i32, i32, i32) {
    %c0_i32 = arith.constant 0 : i32
    %c0_i32_0 = arith.constant 0 : i32
    %c0_i32_1 = arith.constant 0 : i32
    %c0_i32_2 = arith.constant 0 : i32
    return %c0_i32, %c0_i32_0, %c0_i32_1 : i32, i32, i32
  }
  func.func @transform_5(%arg0: i32) -> (i32, i32, i32) {
    %c0_i32 = arith.constant 0 : i32
    %c0_i32_0 = arith.constant 0 : i32
    %c0_i32_1 = arith.constant 0 : i32
    %c0_i32_2 = arith.constant 0 : i32
    return %c0_i32, %c0_i32_0, %c0_i32_1 : i32, i32, i32
  }
}

</mosaic_0001>

<bundles_post_ra>
// kernel: tpu_custom_call.1
= control target key start
LH: loop header
LB: loop body
LE: loop exit
PB: predicated region body
PF: predicated region fallthrough
CT: control target
= control target key end

     0   :  { %11 = vsyncpa [#allocation3], 0  ;;  %s2348_s0 = inlined_call_operand.vmem [shape: s32[8,1], index: 0, kind: input, shape index: {}]   ;;  %s2349_s1 = inlined_call_operand.vmem [shape: f32[64,32], index: 1, kind: input, shape index: {}]   ;;  %s2350_s2 = inlined_call_operand.vmem [shape: f32[4,8,32], index: 2, kind: input, shape index: {}]   ;;  %s2351_s3 = inlined_call_operand.hbm [shape: f32[136,128], index: 3, kind: input, shape index: {}]   ;;  %s2352_s4 = inlined_call_operand.hbm [shape: f32[8,8,32], index: 4, kind: output, shape index: {0}]   ;;  %s2353_s5 = inlined_call_operand.hbm [shape: f32[4,8,32], index: 5, kind: output, shape index: {1}]  }
   0x1   :  { %12 = vsyncpa [#allocation4], 0 }
   0x2   :  { %13 = vsyncpa [#allocation7], 0  ;;  %s24_s20 = sshll.u32 %s2351_s3, 4  ;;  %s1605_s21 = smov [#allocation2]   ;;  %s25_s20 = int_to_ptr.hbm [resolvable:$true] %s24_s20 }
   0x3   :  { %s26_s22 = sshll.u32 %s1605_s21, 4  ;;  %s1606_s23 = smov 128   ;;  %s27_s22 = int_to_ptr.vmem [resolvable:$true] %s26_s22 }
   0x4   :  { %s1607_s24 = smov 8  }
   0x5   :  { %32 = dma.hbm_to_vmem [thread:$0]  %s25_s20, 2176, %s27_s22, [#allocation3], %s1606_s23, %s1606_s23, %s1607_s24  }
   0x6   :  { %1599 = dma.done.wait [#allocation3], 2176  }
   0x7   :  { %1600 = vsyncadd [#allocation3], 4294965120  ;;  %v41_v0 = vld [vmem:[#allocation2 + $0x18] sm:$0xff]  ;;  %v40_v1 = vld [vmem:[#allocation2 + $0x10] sm:$0xff]  ;;  %vm65_vm0 = vcmask 261120   ;;  %s1608_s28 = smov 64  }
   0x8   :  { %v1650_v2 = vld [vmem:[#allocation2 + $0x78] sm:$0xff]  ;;  %102 = vmatpush.msra.mxu0 %v41_v0  ;;  %v1653_v3 = vld [vmem:[#allocation2 + $0x70] sm:$0xff]  ;;  %v39_v4 = vld [vmem:[#allocation2 + $0x8] sm:$0xff]  ;;  %s1609_s6 = smov 32   ;;  %v1610_v23 = vmov 0   ;;  %s1611_s9 = smov 96  }
   0x9   :  { %153 = vmatpush.msra.mxu1 %v1650_v2  ;;  %v1655_v5 = vld [vmem:[#allocation2 + $0x68] sm:$0xff]  ;;  %241 = vmatpush.msra.mxu2 %v1650_v2  ;;  %v38_v6 = vld [vmem:[#allocation2] sm:$0xff]  ;;  %v1339_v17 = vld [vmem:[%s2350_s2 + $0x10] sm:$0xff]  ;;  %vm230_vm7 = vcmask 785408   ;;  %vm223_vm8 = vcmask 523264   ;;  %s1299_s7 = sshll.u32 %s2352_s4, 4  ;;  %s1300_s7 = int_to_ptr.hbm [resolvable:$true] %s1299_s7 }
   0xa   :  { %384 = vmatpush.msra.mxu3 %v1650_v2  ;;  %103 = vmatpush.msra.mxu0 %v40_v1  ;;  %v1660_v7 = vld [vmem:[#allocation2 + $0x60] sm:$0xff]  ;;  %v1719_v41 = vld [vmem:[%s2350_s2 + $0x8] sm:$0xff]  ;;  %v1733_v47 = vld [vmem:[#allocation2 + $0x58] sm:$0xff]  ;;  %s1613_s8 = smov [#allocation6]   ;;  %s1312_s12 = sshll.u32 %s2353_s5, 4  ;;  %s1313_s12 = int_to_ptr.hbm [resolvable:$true] %s1312_s12 }
   0xb   :  { %154 = vmatpush.msra.mxu1 %v1653_v3  ;;  %242 = vmatpush.msra.mxu2 %v1653_v3  ;;  %v56_v8 = vld [vmem:[%s2349_s1] sm:$0xff]  ;;  %v1735_v48 = vld [vmem:[#allocation2 + $0x50] sm:$0xff]  ;;  %v1739_v49 = vld [vmem:[#allocation2 + $0x48] sm:$0xff] }
   0xc   :  { %385 = vmatpush.msra.mxu3 %v1653_v3  ;;  %104 = vmatpush.msra.mxu0 %v39_v4  ;;  %v131_v9 = vld [vmem:[%s2350_s2] sm:$0xff]  ;;  %v1751_v51 = vld [vmem:[#allocation2 + $0x38] sm:$0xff]  ;;  %v1757_v52 = vld [vmem:[#allocation2 + $0x30] sm:$0xff] }
   0xd   :  { %155 = vmatpush.msra.mxu1 %v1655_v5  ;;  %243 = vmatpush.msra.mxu2 %v1655_v5  ;;  %v1686_v10 = vld [vmem:[#allocation2 + $0x80] sm:$0xff]  ;;  %v1763_v53 = vld [vmem:[#allocation2 + $0x28] sm:$0xff]  ;;  %v1340_v56 = vld [vmem:[%s2350_s2 + $0x18] sm:$0xff] }
   0xe   :  { %386 = vmatpush.msra.mxu3 %v1655_v5  ;;  %105 = vmatpush.msra.mxu0 %v38_v6  ;;  %v1689_v11 = vperm.slane %v1686_v10, 0  ;;  %v1700_v21 = vld [vmem:[%s2348_s0] sm:$0xff]  ;;  %v57_v55 = vld [vmem:[%s2349_s1 + $0x8] sm:$0xff]  ;;  %v1843_v63 = vperm.slane %v1686_v10, 1 }
   0xf   :  { %156 = vmatpush.msra.mxu1 %v1660_v7  ;;  %1330 = vmatmul.msk.f32.vlgmr.msra.gmra.mxu0 %vm65_vm0, %v56_v8  ;;  %vm161_vm1 = vcmp.gt.s32.totalorder %v1700_v21, 0  ;;  %v1745_v50 = vld [vmem:[#allocation2 + $0x40] sm:$0xff] }
  0x10   :  { %1341 = vmatmul.msk.f32.vlgmr.msra.gmra.mxu1 %vm65_vm0, %v131_v9  ;;  %244 = vmatpush.msra.mxu2 %v1660_v7  ;;  %v204_v24 = vsel %vm161_vm1, 1, %v1610_v23  ;;  %v1775_v54 = vld [vmem:[#allocation2 + $0x20] sm:$0xff] }
  0x11   :  { %387 = vmatpush.msra.mxu3 %v1660_v7  ;;  %521 = vmatpush.msrb.mxu1 %v1650_v2 }
  0x12   :  { %1069 = vmatpush.msrb.mxu0 %v1650_v2  ;;  %1395 = vset.pattern.permute.xlu2 %v1610_v23 }
  0x13   :  { %522 = vmatpush.msrb.mxu1 %v1653_v3  ;;  %1396 = vset.pattern.permute.xlu0 %v1610_v23 }
  0x14   :  { %1070 = vmatpush.msrb.mxu0 %v1653_v3  ;;  %1397 = vset.pattern.permute.xlu1 %v1610_v23 }
  0x15   :  { %523 = vmatpush.msrb.mxu1 %v1655_v5  ;;  %206 = vperm.xlu2 %1395, %v204_v24  }
  0x16   :  { %1071 = vmatpush.msrb.mxu0 %v1655_v5  ;;  %245 = vmatpush.msra.mxu2 %v1733_v47 }
  0x17   :  { %524 = vmatpush.msrb.mxu1 %v1660_v7  ;;  %388 = vmatpush.msra.mxu3 %v1733_v47 }
  0x18   :  { %1072 = vmatpush.msrb.mxu0 %v1660_v7  ;;  %246 = vmatpush.msra.mxu2 %v1735_v48 }
  0x19   :  { %525 = vmatpush.msrb.mxu1 %v1733_v47  ;;  %389 = vmatpush.msra.mxu3 %v1735_v48 }
  0x1a   :  { %1073 = vmatpush.msrb.mxu0 %v1733_v47  ;;  %247 = vmatpush.msra.mxu2 %v1739_v49 }
  0x1b   :  { %526 = vmatpush.msrb.mxu1 %v1735_v48  ;;  %390 = vmatpush.msra.mxu3 %v1739_v49 }
  0x1c   :  { %1074 = vmatpush.msrb.mxu0 %v1735_v48  ;;  %248 = vmatpush.msra.mxu2 %v1745_v50 }
  0x1d   :  { %209 = vrot.lane.b32.xlu2 %v131_v9, %s1611_s9  ;;  %527 = vmatpush.msrb.mxu1 %v1739_v49 }
  0x1e   :  { %1075 = vmatpush.msrb.mxu0 %v1739_v49  ;;  %391 = vmatpush.msra.mxu3 %v1745_v50 }
  0x1f   :  { %528 = vmatpush.msrb.mxu1 %v1745_v50  ;;  %249 = vmatpush.msra.mxu2 %v1751_v51 }
  0x20   :  { %1076 = vmatpush.msrb.mxu0 %v1745_v50  ;;  %392 = vmatpush.msra.mxu3 %v1751_v51 }
  0x21   :  { %529 = vmatpush.msrb.mxu1 %v1751_v51  ;;  %250 = vmatpush.msra.mxu2 %v1757_v52 }
  0x22   :  { %1077 = vmatpush.msrb.mxu0 %v1751_v51  ;;  %393 = vmatpush.msra.mxu3 %v1757_v52 }
  0x23   :  { %530 = vmatpush.msrb.mxu1 %v1757_v52  ;;  %251 = vmatpush.msra.mxu2 %v1763_v53 }
  0x24   :  { %1078 = vmatpush.msrb.mxu0 %v1757_v52  ;;  %394 = vmatpush.msra.mxu3 %v1763_v53 }
  0x25   :  { %531 = vmatpush.msrb.mxu1 %v1763_v53  ;;  %252 = vmatpush.msra.mxu2 %v1775_v54 }
  0x26   :  { %1079 = vmatpush.msrb.mxu0 %v1763_v53  ;;  %395 = vmatpush.msra.mxu3 %v1775_v54 }
  0x27   :  { %532 = vmatpush.msrb.mxu1 %v1775_v54  ;;  %658 = vmatpush.msrb.mxu2 %v1650_v2 }
  0x28   :  { %795 = vmatpush.msrb.mxu3 %v1650_v2  ;;  %1080 = vmatpush.msrb.mxu0 %v1775_v54 }
  0x29   :  { %932 = vmatpush.msra.mxu1 %v1650_v2  ;;  %659 = vmatpush.msrb.mxu2 %v1653_v3 }
  0x2a   :  { %796 = vmatpush.msrb.mxu3 %v1653_v3  ;;  %1331 = vmatmul.msk.f32.gmra.mxu0 %vm65_vm0, %v57_v55 }
  0x2b   :  { %933 = vmatpush.msra.mxu1 %v1653_v3  ;;  %660 = vmatpush.msrb.mxu2 %v1655_v5 }
  0x2c   :  { %797 = vmatpush.msrb.mxu3 %v1655_v5 }
  0x2d   :  { %934 = vmatpush.msra.mxu1 %v1655_v5  ;;  %661 = vmatpush.msrb.mxu2 %v1660_v7 }
  0x2e   :  { %798 = vmatpush.msrb.mxu3 %v1660_v7 }
  0x2f   :  { %935 = vmatpush.msra.mxu1 %v1660_v7  ;;  %662 = vmatpush.msrb.mxu2 %v1733_v47 }
  0x30   :  { %799 = vmatpush.msrb.mxu3 %v1733_v47 }
  0x31   :  { %663 = vmatpush.msrb.mxu2 %v1735_v48  ;;  %936 = vmatpush.msra.mxu1 %v1733_v47 }
  0x32   :  { %800 = vmatpush.msrb.mxu3 %v1735_v48 }
  0x33   :  { %664 = vmatpush.msrb.mxu2 %v1739_v49  ;;  %937 = vmatpush.msra.mxu1 %v1735_v48 }
  0x34   :  { %801 = vmatpush.msrb.mxu3 %v1739_v49 }
  0x35   :  { %665 = vmatpush.msrb.mxu2 %v1745_v50  ;;  %938 = vmatpush.msra.mxu1 %v1739_v49 }
  0x36   :  { %802 = vmatpush.msrb.mxu3 %v1745_v50 }
  0x37   :  { %666 = vmatpush.msrb.mxu2 %v1751_v51  ;;  %939 = vmatpush.msra.mxu1 %v1745_v50 }
  0x38   :  { %803 = vmatpush.msrb.mxu3 %v1751_v51 }
  0x39   :  { %667 = vmatpush.msrb.mxu2 %v1757_v52  ;;  %940 = vmatpush.msra.mxu1 %v1751_v51 }
  0x3a   :  { %804 = vmatpush.msrb.mxu3 %v1757_v52 }
  0x3b   :  { %668 = vmatpush.msrb.mxu2 %v1763_v53  ;;  %941 = vmatpush.msra.mxu1 %v1757_v52 }
  0x3c   :  { %805 = vmatpush.msrb.mxu3 %v1763_v53 }
  0x3d   :  { %669 = vmatpush.msrb.mxu2 %v1775_v54  ;;  %942 = vmatpush.msra.mxu1 %v1763_v53 }
  0x3e   :  { %806 = vmatpush.msrb.mxu3 %v1775_v54 }
  0x3f   :  { %943 = vmatpush.msra.mxu1 %v1775_v54 }
  0x6f   :  { %v1723_v42 = vpop.permute.xlu2 %206 }
  0x70   :  { %vm208_vm6 = vcmp.eq.s32.totalorder %v1723_v42, 1 }
  0x77   :  { %v210_v44 = vpop.permute.xlu2 %209 }
  0x8c   :  { %v107_v12 = vpop.f32.mrf.mxu0 }
  0x8d   :  { %v158_v13 = vpop.f32.mrf.mxu1  ;;  %v108_v14 = vadd.f32 %v107_v12, %v1689_v11 }
  0x8f   :  { %v162_v15 = vadd.f32 %v158_v13, %v108_v14 }
  0x91   :  { %1398 = vtanh.f32 %v162_v15  ;;  %v1342_v18 = vmul.f32 -1.442695, %v162_v15 }
  0x93   :  { %1400 = vpow2.f32 %v1342_v18 }
  0x97   :  { %v1399_v16 = vpop.eup %1398 }
  0x98   :  { %189 = vrot.lane.b32.xlu0 %v1399_v16, %s1608_s28 }
  0x99   :  { %v1401_v19 = vpop.eup %1400 }
  0x9a   :  { %v166_v20 = vadd.f32 1.0, %v1401_v19 }
  0x9c   :  { %1402 = vrcp.f32 %v166_v20  ;;  %v178_v29 = vand.u32 2147483648, %v166_v20  ;;  %vm172_vm3 = vweird.f32 %v166_v20  ;;  %v176_v30 = vand.u32 2147483647, %v166_v20 }
  0x9e   :  { %v179_v32 = vor.u32 1.1754944e-38, %v178_v29  ;;  %vm177_vm5 = vcmp.eq.f32.partialorder %v176_v30, 8.507059e+37 }
  0xa0   :  { %184 = vrot.lane.b32.xlu0 %v1339_v17, %s1609_s6 }
  0xa2   :  { %v1403_v22 = vpop.eup %1402 }
  0xa3   :  { %v168_v25 = vmul.f32 %v1403_v22, %v166_v20  ;;  %vm173_vm2 = vweird.f32 %v1403_v22 }
  0xa4   :  { %vm174_vm4 = vmor %vm172_vm3, %vm173_vm2  ;;  %vm313_vm2 = vcmp.gt.s32.totalorder %v1700_v21, 1 }
  0xa5   :  { %v169_v26 = vsub.f32 1.0, %v168_v25 }
  0xa7   :  { %v170_v27 = vmul.f32 %v1403_v22, %v169_v26  ;;  %v110_v4 = vpop.f32.mrf.mxu0 }
  0xa8   :  { %v111_v6 = vadd.f32 %v110_v4, %v1689_v11 }
  0xa9   :  { %v171_v28 = vadd.f32 %v1403_v22, %v170_v27 }
  0xab   :  { %v175_v31 = vsel %vm174_vm4, %v1403_v22, %v171_v28 }
  0xac   :  { %v180_v34 = vsel %vm177_vm5, %v179_v32, %v175_v31 }
 0x10a   :  { %v190_v33 = vpop.permute.xlu0 %189 }
 0x10b   :  { %v192_v35 = vmul.f32 %v190_v33, %v180_v34 }
 0x10d   :  { %194 = vrot.lane.b32.xlu1 %v192_v35, %s1609_s6 }
 0x112   :  { %v1709_v36 = vpop.permute.xlu0 %184 }
 0x113   :  { %v187_v37 = vmul.f32 %v1709_v36, %v180_v34 }
 0x17f   :  { %v195_v38 = vpop.permute.xlu1 %194 }
 0x180   :  { %v1712_v39 = vadd.f32 %v195_v38, %v187_v37 }
 0x182   :  { %1404 = vtanh.f32 %v1712_v39 }
 0x188   :  { %v1405_v40 = vpop.eup %1404 }
 0x189   :  { %200 = vrot.lane.b32.xlu1 %v1405_v40, %s1608_s28 }
 0x191   :  { %219 = vrot.lane.b32.xlu1 %v1719_v41, %s1609_s6 }
 0x1fb   :  { %v201_v43 = vpop.permute.xlu1 %200 }
 0x1fc   :  { %v203_v45 = vmul.f32 %v201_v43, %v180_v34 }
 0x1fe   :  { %215 = vrot.lane.b32.xlu0 %v203_v45, %s1609_s6  ;;  %v1729_v46 = vsel %vm208_vm6, %v203_v45, %v210_v44 }
 0x1ff   :  { %226 = vrot.lane.b32.xlu2 %v1729_v46, %s1611_s9 }
 0x203   :  { %v220_v57 = vpop.permute.xlu1 %219 }
 0x207   :  { %282 = vrot.lane.b32.xlu2 %v1340_v56, %s1609_s6 }
 0x259   :  { %v227_v61 = vpop.permute.xlu2 %226 }
 0x25a   :  { %v229_v62 = vsel %vm223_vm8, 0.0, %v227_v61 }
 0x270   :  { %v216_v58 = vpop.permute.xlu0 %215 }
 0x271   :  { %v222_v59 = vsel %vm65_vm0, %v216_v58, %v220_v57  ;;  %v1853_v58 = vpop.permute.xlu2 %282 }
 0x272   :  { %v224_v60 = vsel %vm223_vm8, %v222_v59, 0.0 }
 0x273   :  { %1343 = vmatmul.msk.f32.vlgmr.msra.gmra.mxu2 %vm230_vm7, %v224_v60 }
 0x274   :  { %1206 = vmatpush.msra.mxu2 %v1650_v2 }
 0x276   :  { %1207 = vmatpush.msra.mxu2 %v1653_v3 }
 0x278   :  { %1208 = vmatpush.msra.mxu2 %v1655_v5 }
 0x27a   :  { %1209 = vmatpush.msra.mxu2 %v1660_v7 }
 0x27b   :  { %1344 = vmatmul.msk.f32.gmra.mxu2 %vm230_vm7, %v229_v62  ;;  %v1863_v62 = vsel %vm208_vm6, %v1712_v39, %v1709_v36 }
 0x27c   :  { %1210 = vmatpush.msra.mxu2 %v1733_v47 }
 0x27e   :  { %1211 = vmatpush.msra.mxu2 %v1735_v48 }
 0x280   :  { %1212 = vmatpush.msra.mxu2 %v1739_v49 }
 0x282   :  { %1213 = vmatpush.msra.mxu2 %v1745_v50 }
 0x284   :  { %1214 = vmatpush.msra.mxu2 %v1751_v51 }
 0x286   :  { %1215 = vmatpush.msra.mxu2 %v1757_v52 }
 0x288   :  { %1216 = vmatpush.msra.mxu2 %v1763_v53 }
 0x28a   :  { %1217 = vmatpush.msra.mxu2 %v1775_v54 }
 0x2f6   :  { %v254_v0 = vpop.f32.mrf.mxu2 }
 0x2f7   :  { %v260_v1 = vadd.f32 %v254_v0, %v1843_v63 }
 0x2f9   :  { %1406 = vtanh.f32 %v260_v1  ;;  %v1345_v14 = vmul.f32 -1.442695, %v260_v1 }
 0x2fe   :  { %v257_v8 = vpop.f32.mrf.mxu2 }
 0x2ff   :  { %v1407_v9 = vpop.eup %1406  ;;  %v314_v12 = vadd.f32 %v257_v8, %v111_v6  ;;  %v352_v6 = vsel %vm313_vm2, 1, %v1610_v23 }
 0x300   :  { %287 = vrot.lane.b32.xlu0 %v1407_v9, %s1608_s28 }
 0x301   :  { %1408 = vtanh.f32 %v314_v12  ;;  %v1346_v10 = vmul.f32 -1.442695, %v314_v12 }
 0x302   :  { %1410 = vpow2.f32 %v1345_v14 }
 0x303   :  { %1412 = vpow2.f32 %v1346_v10 }
 0x307   :  { %v1409_v13 = vpop.eup %1408 }
 0x308   :  { %337 = vrot.lane.b32.xlu1 %v1409_v13, %s1608_s28  ;;  %v1411_v15 = vpop.eup %1410 }
 0x309   :  { %v264_v16 = vadd.f32 1.0, %v1411_v15  ;;  %v1413_v17 = vpop.eup %1412 }
 0x30a   :  { %v318_v18 = vadd.f32 1.0, %v1413_v17 }
 0x30b   :  { %1414 = vrcp.f32 %v264_v16  ;;  %v276_v29 = vand.u32 2147483648, %v264_v16  ;;  %vm270_vm10 = vweird.f32 %v264_v16  ;;  %v274_v30 = vand.u32 2147483647, %v264_v16 }
 0x30c   :  { %1416 = vrcp.f32 %v318_v18  ;;  %v330_v40 = vand.u32 2147483648, %v318_v18  ;;  %vm324_vm14 = vweird.f32 %v318_v18  ;;  %v328_v43 = vand.u32 2147483647, %v318_v18 }
 0x30d   :  { %v277_v33 = vor.u32 1.1754944e-38, %v276_v29  ;;  %vm275_vm12 = vcmp.eq.f32.partialorder %v274_v30, 8.507059e+37 }
 0x30e   :  { %v331_v45 = vor.u32 1.1754944e-38, %v330_v40  ;;  %vm329_vm1 = vcmp.eq.f32.partialorder %v328_v43, 8.507059e+37 }
 0x311   :  { %v1415_v19 = vpop.eup %1414 }
 0x312   :  { %v266_v20 = vmul.f32 %v1415_v19, %v264_v16  ;;  %v1417_v24 = vpop.eup %1416  ;;  %vm271_vm9 = vweird.f32 %v1415_v19  ;;  %v58_v16 = vld [vmem:[%s2349_s1 + $0x10] sm:$0xff] }
 0x313   :  { %v320_v26 = vmul.f32 %v1417_v24, %v318_v18  ;;  %vm272_vm11 = vmor %vm270_vm10, %vm271_vm9  ;;  %vm325_vm13 = vweird.f32 %v1417_v24  ;;  %1332 = vmatmul.msk.f32.gmra.mxu0 %vm65_vm0, %v58_v16 }
 0x314   :  { %v267_v22 = vsub.f32 1.0, %v266_v20  ;;  %vm326_vm15 = vmor %vm324_vm14, %vm325_vm13 }
 0x315   :  { %v321_v28 = vsub.f32 1.0, %v320_v26 }
 0x316   :  { %v268_v25 = vmul.f32 %v1415_v19, %v267_v22 }
 0x317   :  { %v322_v32 = vmul.f32 %v1417_v24, %v321_v28 }
 0x318   :  { %v269_v27 = vadd.f32 %v1415_v19, %v268_v25 }
 0x319   :  { %v323_v38 = vadd.f32 %v1417_v24, %v322_v32 }
 0x31a   :  { %v273_v31 = vsel %vm272_vm11, %v1415_v19, %v269_v27 }
 0x31b   :  { %v278_v34 = vsel %vm275_vm12, %v277_v33, %v273_v31  ;;  %v327_v44 = vsel %vm326_vm15, %v1417_v24, %v323_v38  ;;  %vm450_vm15 = vcmp.gt.s32.totalorder %v1700_v21, 2 }
 0x31c   :  { %v332_v56 = vsel %vm329_vm1, %v331_v45, %v327_v44  ;;  %v285_v59 = vmul.f32 %v1853_v58, %v278_v34 }
 0x31d   :  { %v335_v0 = vmul.f32 %v332_v56, %v1863_v62 }
 0x372   :  { %v288_v35 = vpop.permute.xlu0 %287 }
 0x373   :  { %v290_v37 = vmul.f32 %v288_v35, %v278_v34 }
 0x375   :  { %292 = vrot.lane.b32.xlu0 %v290_v37, %s1609_s6 }
 0x37a   :  { %v338_v55 = vpop.permute.xlu1 %337 }
 0x37b   :  { %v340_v57 = vmul.f32 %v338_v55, %v332_v56 }
 0x37d   :  { %342 = vrot.lane.b32.xlu1 %v340_v57, %s1609_s6 }
 0x385   :  { %302 = vrot.lane.b32.xlu1 %v1719_v41, %s1611_s9 }
 0x3e7   :  { %v293_v60 = vpop.permute.xlu0 %292 }
 0x3e8   :  { %v1856_v61 = vadd.f32 %v293_v60, %v285_v59 }
 0x3ea   :  { %1418 = vtanh.f32 %v1856_v61 }
 0x3ef   :  { %v343_v1 = vpop.permute.xlu1 %342 }
 0x3f0   :  { %v1419_v4 = vpop.eup %1418  ;;  %v1866_v41 = vadd.f32 %v343_v1, %v335_v0 }
 0x3f1   :  { %298 = vrot.lane.b32.xlu2 %v1419_v4, %s1608_s28 }
 0x3f2   :  { %1420 = vtanh.f32 %v1866_v41 }
 0x3f7   :  { %v303_v39 = vpop.permute.xlu1 %302 }
 0x3f8   :  { %v1421_v8 = vpop.eup %1420 }
 0x3f9   :  { %348 = vrot.lane.b32.xlu0 %v1421_v8, %s1608_s28  ;;  %354 = vperm.xlu2 %1395, %v352_v6   ;;  %v489_v6 = vsel %vm450_vm15, 1, %v1610_v23  ;;  %v1926_v8 = vsel %vm208_vm6, %v1856_v61, %v1853_v58 }
 0x44b   :  { %v299_v36 = vpop.permute.xlu2 %298 }
 0x44c   :  { %v1873_v9 = vmul.f32 %v299_v36, %v278_v34 }
 0x44e   :  { %v1878_v12 = vsel %vm208_vm6, %v1873_v9, %v303_v39 }
 0x44f   :  { %364 = vrot.lane.b32.xlu1 %v1878_v12, %s1608_s28 }
 0x453   :  { %v1882_v13 = vpop.permute.xlu2 %354 }
 0x454   :  { %vm356_vm3 = vcmp.eq.s32.totalorder %v1882_v13, 1 }
 0x455   :  { %v1937_v16 = vsel %vm356_vm3, %v1866_v41, %v1863_v62 }
 0x46b   :  { %v349_v14 = vpop.permute.xlu0 %348 }
 0x46c   :  { %v351_v10 = vmul.f32 %v349_v14, %v332_v56 }
 0x46e   :  { %360 = vrot.lane.b32.xlu0 %v351_v10, %s1609_s6  ;;  %v1889_v15 = vsel %vm356_vm3, %v351_v10, %v1729_v46 }
 0x46f   :  { %370 = vrot.lane.b32.xlu2 %v1889_v15, %s1611_s9 }
 0x4c1   :  { %v365_v17 = vpop.permute.xlu1 %364 }
 0x4c9   :  { %v371_v46 = vpop.permute.xlu2 %370 }
 0x4ca   :  { %v373_v22 = vsel %vm223_vm8, 0.0, %v371_v46 }
 0x4e0   :  { %v361_v18 = vpop.permute.xlu0 %360 }
 0x4e1   :  { %v367_v19 = vsel %vm65_vm0, %v361_v18, %v365_v17 }
 0x4e2   :  { %v368_v20 = vsel %vm223_vm8, %v367_v19, 0.0 }
 0x4e3   :  { %1347 = vmatmul.msk.f32.vlgmr.msra.gmra.mxu3 %vm230_vm7, %v368_v20 }
 0x4e4   :  { %1374 = vmatpush.msra.mxu3 %v1650_v2 }
 0x4e6   :  { %1375 = vmatpush.msra.mxu3 %v1653_v3 }
 0x4e8   :  { %1376 = vmatpush.msra.mxu3 %v1655_v5  ;;  %v113_v5 = vpop.f32.mrf.mxu0 }
 0x4ea   :  { %1377 = vmatpush.msra.mxu3 %v1660_v7  ;;  %v114_v7 = vadd.f32 %v113_v5, %v1689_v11 }
 0x4eb   :  { %1348 = vmatmul.msk.f32.gmra.mxu3 %vm230_vm7, %v373_v22 }
 0x4ec   :  { %1378 = vmatpush.msra.mxu3 %v1733_v47 }
 0x4ee   :  { %1379 = vmatpush.msra.mxu3 %v1735_v48 }
 0x4f0   :  { %1380 = vmatpush.msra.mxu3 %v1739_v49 }
 0x4f2   :  { %1381 = vmatpush.msra.mxu3 %v1745_v50 }
 0x4f4   :  { %1382 = vmatpush.msra.mxu3 %v1751_v51 }
 0x4f6   :  { %1383 = vmatpush.msra.mxu3 %v1757_v52 }
 0x4f8   :  { %1384 = vmatpush.msra.mxu3 %v1763_v53 }
 0x4fa   :  { %1385 = vmatpush.msra.mxu3 %v1775_v54 }
 0x566   :  { %v397_v2 = vpop.f32.mrf.mxu3 }
 0x567   :  { %v403_v3 = vadd.f32 %v397_v2, %v1843_v63 }
 0x569   :  { %1422 = vtanh.f32 %v403_v3  ;;  %v1349_v51 = vmul.f32 -1.442695, %v403_v3 }
 0x56e   :  { %v400_v47 = vpop.f32.mrf.mxu3 }
 0x56f   :  { %v1423_v48 = vpop.eup %1422  ;;  %v451_v49 = vadd.f32 %v400_v47, %v114_v7 }
 0x570   :  { %426 = vrot.lane.b32.xlu0 %v1423_v48, %s1608_s28 }
 0x571   :  { %1424 = vtanh.f32 %v451_v49  ;;  %v1350_v52 = vmul.f32 -1.442695, %v451_v49 }
 0x572   :  { %1426 = vpow2.f32 %v1349_v51 }
 0x573   :  { %1428 = vpow2.f32 %v1350_v52 }
 0x577   :  { %v1425_v50 = vpop.eup %1424 }
 0x578   :  { %474 = vrot.lane.b32.xlu1 %v1425_v50, %s1608_s28  ;;  %v1427_v53 = vpop.eup %1426 }
 0x579   :  { %v407_v54 = vadd.f32 1.0, %v1427_v53  ;;  %v1429_v24 = vpop.eup %1428 }
 0x57a   :  { %v455_v25 = vadd.f32 1.0, %v1429_v24 }
 0x57b   :  { %1430 = vrcp.f32 %v407_v54  ;;  %v419_v34 = vand.u32 2147483648, %v407_v54  ;;  %vm413_vm5 = vweird.f32 %v407_v54  ;;  %v417_v35 = vand.u32 2147483647, %v407_v54 }
 0x57c   :  { %1432 = vrcp.f32 %v455_v25  ;;  %v467_v56 = vand.u32 2147483648, %v455_v25  ;;  %vm461_vm12 = vweird.f32 %v455_v25  ;;  %v465_v57 = vand.u32 2147483647, %v455_v25 }
 0x57d   :  { %v420_v40 = vor.u32 1.1754944e-38, %v419_v34  ;;  %vm418_vm10 = vcmp.eq.f32.partialorder %v417_v35, 8.507059e+37 }
 0x57e   :  { %v468_v60 = vor.u32 1.1754944e-38, %v467_v56  ;;  %vm466_vm14 = vcmp.eq.f32.partialorder %v465_v57, 8.507059e+37 }
 0x581   :  { %v1431_v26 = vpop.eup %1430 }
 0x582   :  { %v409_v27 = vmul.f32 %v1431_v26, %v407_v54  ;;  %v1433_v29 = vpop.eup %1432  ;;  %vm414_vm4 = vweird.f32 %v1431_v26 }
 0x583   :  { %v457_v31 = vmul.f32 %v1433_v29, %v455_v25  ;;  %vm415_vm9 = vmor %vm413_vm5, %vm414_vm4  ;;  %vm462_vm11 = vweird.f32 %v1433_v29 }
 0x584   :  { %v410_v28 = vsub.f32 1.0, %v409_v27  ;;  %vm463_vm13 = vmor %vm461_vm12, %vm462_vm11 }
 0x585   :  { %v458_v33 = vsub.f32 1.0, %v457_v31 }
 0x586   :  { %v411_v30 = vmul.f32 %v1431_v26, %v410_v28 }
 0x587   :  { %v459_v38 = vmul.f32 %v1433_v29, %v458_v33 }
 0x588   :  { %v412_v32 = vadd.f32 %v1431_v26, %v411_v30 }
 0x589   :  { %v460_v55 = vadd.f32 %v1433_v29, %v459_v38 }
 0x58a   :  { %v416_v37 = vsel %vm415_vm9, %v1431_v26, %v412_v32 }
 0x58b   :  { %v421_v44 = vsel %vm418_vm10, %v420_v40, %v416_v37  ;;  %v464_v59 = vsel %vm463_vm13, %v1433_v29, %v460_v55 }
 0x58c   :  { %v469_v1 = vsel %vm466_vm14, %v468_v60, %v464_v59  ;;  %v424_v36 = vmul.f32 %v421_v44, %v1926_v8  ;;  %vm587_vm14 = vcmp.gt.s32.totalorder %v1700_v21, 3 }
 0x58d   :  { %v472_v17 = vmul.f32 %v469_v1, %v1937_v16 }
 0x5e2   :  { %v427_v43 = vpop.permute.xlu0 %426 }
 0x5e3   :  { %v429_v45 = vmul.f32 %v427_v43, %v421_v44 }
 0x5e5   :  { %431 = vrot.lane.b32.xlu2 %v429_v45, %s1609_s6 }
 0x5ea   :  { %v475_v0 = vpop.permute.xlu1 %474 }
 0x5eb   :  { %v477_v4 = vmul.f32 %v475_v0, %v469_v1 }
 0x5ed   :  { %479 = vrot.lane.b32.xlu0 %v477_v4, %s1609_s6 }
 0x5f5   :  { %491 = vperm.xlu0 %1396, %v489_v6  }
 0x63f   :  { %v432_v39 = vpop.permute.xlu2 %431 }
 0x640   :  { %v1929_v14 = vadd.f32 %v432_v39, %v424_v36 }
 0x642   :  { %1434 = vtanh.f32 %v1929_v14 }
 0x648   :  { %v1435_v10 = vpop.eup %1434 }
 0x649   :  { %437 = vrot.lane.b32.xlu1 %v1435_v10, %s1608_s28 }
 0x65f   :  { %v480_v58 = vpop.permute.xlu0 %479 }
 0x660   :  { %v1940_v61 = vadd.f32 %v480_v58, %v472_v17 }
 0x662   :  { %1436 = vtanh.f32 %v1940_v61 }
 0x667   :  { %v1955_v22 = vpop.permute.xlu0 %491 }
 0x668   :  { %v1437_v18 = vpop.eup %1436  ;;  %vm2354_vm1 = vcmp.eq.s32.totalorder %v1955_v22, 1 }
 0x669   :  { %485 = vrot.lane.b32.xlu2 %v1437_v18, %s1608_s28  ;;  %v626_v18 = vsel %vm587_vm14, 1, %v1610_v23  ;;  %vm724_vm14 = vcmp.gt.s32.totalorder %v1700_v21, 4 }
 0x6bb   :  { %v438_v19 = vpop.permute.xlu1 %437 }
 0x6bc   :  { %v1944_v20 = vmul.f32 %v438_v19, %v421_v44  ;;  %v1986_v19 = vsel %vm356_vm3, %v1929_v14, %v1926_v8 }
 0x6be   :  { %v1950_v46 = vsel %vm356_vm3, %v1944_v20, %v1878_v12  ;;  %v59_v12 = vld [vmem:[%s2349_s1 + $0x18] sm:$0xff] }
 0x6bf   :  { %501 = vrot.lane.b32.xlu2 %v1950_v46, %s1608_s28  ;;  %1333 = vmatmul.msk.f32.gmra.mxu0 %vm65_vm0, %v59_v12 }
 0x6c3   :  { %v486_v62 = vpop.permute.xlu2 %485 }
 0x6c4   :  { %v488_v41 = vmul.f32 %v486_v62, %v469_v1 }
 0x6c6   :  { %497 = vrot.lane.b32.xlu1 %v488_v41, %s1609_s6  ;;  %v1961_v2 = vsel %vm2354_vm1, %v488_v41, %v1889_v15 }
 0x6ce   :  { %507 = vrot.lane.b32.xlu1 %v1961_v2, %s1611_s9 }
 0x719   :  { %v502_v3 = vpop.permute.xlu2 %501 }
 0x738   :  { %v498_v5 = vpop.permute.xlu1 %497 }
 0x739   :  { %v504_v7 = vsel %vm65_vm0, %v498_v5, %v502_v3  ;;  %v1996_v3 = vsel %vm2354_vm1, %v1940_v61, %v1937_v16 }
 0x73a   :  { %v505_v47 = vsel %vm223_vm8, %v504_v7, 0.0 }
 0x73b   :  { %1351 = vmatmul.msk.f32.vlgmr.msrb.gmra.mxu1 %vm230_vm7, %v505_v47 }
 0x73c   :  { %v116_v51 = vpop.f32.mrf.mxu0 }
 0x73d   :  { %v117_v52 = vadd.f32 %v116_v51, %v1689_v11 }
 0x740   :  { %v508_v48 = vpop.permute.xlu1 %507 }
 0x741   :  { %v510_v15 = vsel %vm223_vm8, 0.0, %v508_v48 }
 0x743   :  { %1352 = vmatmul.msk.f32.gmra.mxu1 %vm230_vm7, %v510_v15 }
 0x7b8   :  { %v534_v49 = vpop.f32.mrf.mxu1 }
 0x7b9   :  { %v540_v50 = vadd.f32 %v534_v49, %v1843_v63 }
 0x7bb   :  { %1438 = vtanh.f32 %v540_v50  ;;  %v1353_v26 = vmul.f32 -1.442695, %v540_v50 }
 0x7c0   :  { %v537_v53 = vpop.f32.mrf.mxu1 }
 0x7c1   :  { %v1439_v54 = vpop.eup %1438  ;;  %v588_v24 = vadd.f32 %v537_v53, %v117_v52 }
 0x7c2   :  { %563 = vrot.lane.b32.xlu2 %v1439_v54, %s1608_s28 }
 0x7c3   :  { %1440 = vtanh.f32 %v588_v24  ;;  %v1354_v32 = vmul.f32 -1.442695, %v588_v24 }
 0x7c4   :  { %1442 = vpow2.f32 %v1353_v26 }
 0x7c9   :  { %v1441_v25 = vpop.eup %1440 }
 0x7ca   :  { %611 = vrot.lane.b32.xlu0 %v1441_v25, %s1608_s28  ;;  %v1443_v27 = vpop.eup %1442 }
 0x7cb   :  { %v544_v28 = vadd.f32 1.0, %v1443_v27 }
 0x7cd   :  { %1444 = vrcp.f32 %v544_v28  ;;  %v556_v35 = vand.u32 2147483648, %v544_v28  ;;  %vm550_vm4 = vweird.f32 %v544_v28  ;;  %v554_v37 = vand.u32 2147483647, %v544_v28 }
 0x7ce   :  { %1446 = vpow2.f32 %v1354_v32 }
 0x7cf   :  { %v557_v43 = vor.u32 1.1754944e-38, %v556_v35  ;;  %vm555_vm9 = vcmp.eq.f32.partialorder %v554_v37, 8.507059e+37 }
 0x7d3   :  { %v1445_v29 = vpop.eup %1444 }
 0x7d4   :  { %v546_v30 = vmul.f32 %v1445_v29, %v544_v28  ;;  %vm551_vm2 = vweird.f32 %v1445_v29  ;;  %v1447_v38 = vpop.eup %1446 }
 0x7d5   :  { %vm552_vm5 = vmor %vm550_vm4, %vm551_vm2  ;;  %v592_v44 = vadd.f32 1.0, %v1447_v38 }
 0x7d6   :  { %v547_v31 = vsub.f32 1.0, %v546_v30 }
 0x7d7   :  { %1448 = vrcp.f32 %v592_v44  ;;  %v604_v4 = vand.u32 2147483648, %v592_v44  ;;  %vm598_vm11 = vweird.f32 %v592_v44  ;;  %v602_v6 = vand.u32 2147483647, %v592_v44 }
 0x7d8   :  { %v548_v33 = vmul.f32 %v1445_v29, %v547_v31 }
 0x7d9   :  { %v605_v39 = vor.u32 1.1754944e-38, %v604_v4  ;;  %vm603_vm13 = vcmp.eq.f32.partialorder %v602_v6, 8.507059e+37 }
 0x7da   :  { %v549_v34 = vadd.f32 %v1445_v29, %v548_v33 }
 0x7dc   :  { %v553_v40 = vsel %vm552_vm5, %v1445_v29, %v549_v34 }
 0x7dd   :  { %v558_v55 = vsel %vm555_vm9, %v557_v43, %v553_v40  ;;  %v1449_v57 = vpop.eup %1448 }
 0x7de   :  { %v594_v59 = vmul.f32 %v1449_v57, %v592_v44  ;;  %vm599_vm10 = vweird.f32 %v1449_v57  ;;  %v561_v62 = vmul.f32 %v558_v55, %v1986_v19 }
 0x7df   :  { %vm600_vm12 = vmor %vm598_vm11, %vm599_vm10 }
 0x7e0   :  { %v595_v60 = vsub.f32 1.0, %v594_v59 }
 0x7e2   :  { %v596_v0 = vmul.f32 %v1449_v57, %v595_v60 }
 0x7e4   :  { %v597_v1 = vadd.f32 %v1449_v57, %v596_v0 }
 0x7e6   :  { %v601_v36 = vsel %vm600_vm12, %v1449_v57, %v597_v1 }
 0x7e7   :  { %v606_v17 = vsel %vm603_vm13, %v605_v39, %v601_v36 }
 0x7e8   :  { %v609_v5 = vmul.f32 %v606_v17, %v1996_v3 }
 0x81c   :  { %v564_v45 = vpop.permute.xlu2 %563 }
 0x81d   :  { %v566_v56 = vmul.f32 %v564_v45, %v558_v55 }
 0x81f   :  { %568 = vrot.lane.b32.xlu1 %v566_v56, %s1609_s6 }
 0x83c   :  { %v612_v10 = vpop.permute.xlu0 %611 }
 0x83d   :  { %v614_v58 = vmul.f32 %v612_v10, %v606_v17 }
 0x83f   :  { %616 = vrot.lane.b32.xlu2 %v614_v58, %s1609_s6 }
 0x847   :  { %628 = vperm.xlu2 %1395, %v626_v18  }
 0x891   :  { %v569_v41 = vpop.permute.xlu1 %568 }
 0x892   :  { %v1989_v12 = vadd.f32 %v569_v41, %v561_v62 }
 0x894   :  { %1450 = vtanh.f32 %v1989_v12 }
 0x899   :  { %v617_v7 = vpop.permute.xlu2 %616 }
 0x89a   :  { %v1451_v47 = vpop.eup %1450  ;;  %v1999_v48 = vadd.f32 %v617_v7, %v609_v5 }
 0x89b   :  { %574 = vrot.lane.b32.xlu0 %v1451_v47, %s1608_s28 }
 0x89c   :  { %1452 = vtanh.f32 %v1999_v48 }
 0x8a1   :  { %v2014_v61 = vpop.permute.xlu2 %628 }
 0x8a2   :  { %v1453_v8 = vpop.eup %1452  ;;  %vm630_vm15 = vcmp.eq.s32.totalorder %v2014_v61, 1 }
 0x8a3   :  { %622 = vrot.lane.b32.xlu1 %v1453_v8, %s1608_s28  ;;  %v2057_v21 = vsel %vm630_vm15, %v1999_v48, %v1996_v3 }
 0x90d   :  { %v575_v14 = vpop.permute.xlu0 %574 }
 0x90e   :  { %v2004_v15 = vmul.f32 %v575_v14, %v558_v55 }
 0x910   :  { %v2010_v16 = vsel %vm2354_vm1, %v2004_v15, %v1950_v46  ;;  %v60_v46 = vld [vmem:[%s2349_s1 + $0x20] sm:$0xff] }
 0x911   :  { %638 = vrot.lane.b32.xlu1 %v2010_v16, %s1608_s28  ;;  %1334 = vmatmul.msk.f32.gmra.mxu0 %vm65_vm0, %v60_v46 }
 0x915   :  { %v623_v49 = vpop.permute.xlu1 %622 }
 0x916   :  { %v625_v50 = vmul.f32 %v623_v49, %v606_v17  ;;  %v763_v49 = vsel %vm724_vm14, 1, %v1610_v23 }
 0x918   :  { %634 = vrot.lane.b32.xlu0 %v625_v50, %s1609_s6  ;;  %v2021_v51 = vsel %vm630_vm15, %v625_v50, %v1961_v2  ;;  %v2046_v50 = vsel %vm2354_vm1, %v1989_v12, %v1986_v19 }
 0x919   :  { %644 = vrot.lane.b32.xlu2 %v2021_v51, %s1611_s9 }
 0x973   :  { %v645_v25 = vpop.permute.xlu2 %644 }
 0x974   :  { %v647_v2 = vsel %vm223_vm8, 0.0, %v645_v25 }
 0x983   :  { %v639_v52 = vpop.permute.xlu1 %638 }
 0x98a   :  { %v635_v53 = vpop.permute.xlu0 %634 }
 0x98b   :  { %v641_v54 = vsel %vm65_vm0, %v635_v53, %v639_v52 }
 0x98c   :  { %v642_v24 = vsel %vm223_vm8, %v641_v54, 0.0 }
 0x98d   :  { %1355 = vmatmul.msk.f32.vlgmr.msrb.gmra.mxu2 %vm230_vm7, %v642_v24 }
 0x98e   :  { %v119_v28 = vpop.f32.mrf.mxu0 }
 0x98f   :  { %v120_v29 = vadd.f32 %v119_v28, %v1689_v11 }
 0x995   :  { %1356 = vmatmul.msk.f32.gmra.mxu2 %vm230_vm7, %v647_v2 }
 0xa10   :  { %v671_v26 = vpop.f32.mrf.mxu2 }
 0xa11   :  { %v677_v27 = vadd.f32 %v671_v26, %v1843_v63 }
 0xa13   :  { %1454 = vtanh.f32 %v677_v27  ;;  %v1357_v34 = vmul.f32 -1.442695, %v677_v27 }
 0xa18   :  { %v674_v30 = vpop.f32.mrf.mxu2 }
 0xa19   :  { %v1455_v31 = vpop.eup %1454  ;;  %v725_v32 = vadd.f32 %v674_v30, %v120_v29 }
 0xa1a   :  { %700 = vrot.lane.b32.xlu0 %v1455_v31, %s1608_s28 }
 0xa1b   :  { %1456 = vtanh.f32 %v725_v32  ;;  %v1358_v35 = vmul.f32 -1.442695, %v725_v32 }
 0xa1c   :  { %1458 = vpow2.f32 %v1357_v34 }
 0xa1d   :  { %1460 = vpow2.f32 %v1358_v35 }
 0xa21   :  { %v1457_v33 = vpop.eup %1456 }
 0xa22   :  { %748 = vrot.lane.b32.xlu1 %v1457_v33, %s1608_s28  ;;  %v1459_v37 = vpop.eup %1458 }
 0xa23   :  { %v681_v38 = vadd.f32 1.0, %v1459_v37  ;;  %v1461_v40 = vpop.eup %1460 }
 0xa24   :  { %v729_v43 = vadd.f32 1.0, %v1461_v40 }
 0xa25   :  { %1462 = vrcp.f32 %v681_v38  ;;  %v693_v1 = vand.u32 2147483648, %v681_v38  ;;  %vm687_vm4 = vweird.f32 %v681_v38  ;;  %v691_v4 = vand.u32 2147483647, %v681_v38 }
 0xa26   :  { %1464 = vrcp.f32 %v729_v43  ;;  %v741_v62 = vand.u32 2147483648, %v729_v43  ;;  %vm735_vm11 = vweird.f32 %v729_v43  ;;  %v739_v41 = vand.u32 2147483647, %v729_v43 }
 0xa27   :  { %v694_v39 = vor.u32 1.1754944e-38, %v693_v1  ;;  %vm692_vm9 = vcmp.eq.f32.partialorder %v691_v4, 8.507059e+37 }
 0xa28   :  { %v742_v7 = vor.u32 1.1754944e-38, %v741_v62  ;;  %vm740_vm13 = vcmp.eq.f32.partialorder %v739_v41, 8.507059e+37 }
 0xa2b   :  { %v1463_v44 = vpop.eup %1462 }
 0xa2c   :  { %v683_v45 = vmul.f32 %v1463_v44, %v681_v38  ;;  %v1465_v56 = vpop.eup %1464  ;;  %vm688_vm2 = vweird.f32 %v1463_v44 }
 0xa2d   :  { %v731_v59 = vmul.f32 %v1465_v56, %v729_v43  ;;  %vm689_vm5 = vmor %vm687_vm4, %vm688_vm2  ;;  %vm736_vm10 = vweird.f32 %v1465_v56 }
 0xa2e   :  { %v684_v55 = vsub.f32 1.0, %v683_v45  ;;  %vm737_vm12 = vmor %vm735_vm11, %vm736_vm10 }
 0xa2f   :  { %v732_v0 = vsub.f32 1.0, %v731_v59 }
 0xa30   :  { %v685_v57 = vmul.f32 %v1463_v44, %v684_v55 }
 0xa31   :  { %v733_v36 = vmul.f32 %v1465_v56, %v732_v0 }
 0xa32   :  { %v686_v60 = vadd.f32 %v1463_v44, %v685_v57 }
 0xa33   :  { %v734_v18 = vadd.f32 %v1465_v56, %v733_v36 }
 0xa34   :  { %v690_v6 = vsel %vm689_vm5, %v1463_v44, %v686_v60 }
 0xa35   :  { %v695_v17 = vsel %vm692_vm9, %v694_v39, %v690_v6  ;;  %v738_v5 = vsel %vm737_vm12, %v1465_v56, %v734_v18 }
 0xa36   :  { %v743_v8 = vsel %vm740_vm13, %v742_v7, %v738_v5  ;;  %v698_v46 = vmul.f32 %v695_v17, %v2046_v50 }
 0xa37   :  { %v746_v24 = vmul.f32 %v743_v8, %v2057_v21 }
 0xa8c   :  { %v701_v10 = vpop.permute.xlu0 %700 }
 0xa8d   :  { %v703_v58 = vmul.f32 %v701_v10, %v695_v17 }
 0xa8f   :  { %705 = vrot.lane.b32.xlu2 %v703_v58, %s1609_s6 }
 0xa94   :  { %v749_v47 = vpop.permute.xlu1 %748 }
 0xa95   :  { %v751_v14 = vmul.f32 %v749_v47, %v743_v8 }
 0xa97   :  { %753 = vrot.lane.b32.xlu0 %v751_v14, %s1609_s6 }
 0xa9f   :  { %765 = vperm.xlu0 %1396, %v763_v49   ;;  %v2102_v49 = vld [vmem:[%s2348_s0] sm:$0xff] }
 0xaa0   :  { %vm861_vm11 = vcmp.gt.s32.totalorder %v2102_v49, 5 }
 0xae9   :  { %v706_v52 = vpop.permute.xlu2 %705 }
 0xaea   :  { %v2049_v53 = vadd.f32 %v706_v52, %v698_v46  ;;  %v900_v52 = vsel %vm861_vm11, 1, %v1610_v23 }
 0xaec   :  { %1466 = vtanh.f32 %v2049_v53 }
 0xaf2   :  { %v1467_v54 = vpop.eup %1466 }
 0xaf3   :  { %711 = vrot.lane.b32.xlu1 %v1467_v54, %s1608_s28 }
 0xb09   :  { %v754_v19 = vpop.permute.xlu0 %753 }
 0xb0a   :  { %v2060_v12 = vadd.f32 %v754_v19, %v746_v24 }
 0xb0c   :  { %1468 = vtanh.f32 %v2060_v12 }
 0xb11   :  { %v2074_v3 = vpop.permute.xlu0 %765 }
 0xb12   :  { %v1469_v25 = vpop.eup %1468  ;;  %vm2355_vm2 = vcmp.eq.s32.totalorder %v2074_v3, 1 }
 0xb13   :  { %759 = vrot.lane.b32.xlu2 %v1469_v25, %s1608_s28 }
 0xb65   :  { %v712_v2 = vpop.permute.xlu1 %711 }
 0xb66   :  { %v2064_v26 = vmul.f32 %v712_v2, %v695_v17 }
 0xb68   :  { %v2070_v27 = vsel %vm630_vm15, %v2064_v26, %v2010_v16  ;;  %v61_v16 = vld [vmem:[%s2349_s1 + $0x28] sm:$0xff] }
 0xb69   :  { %775 = vrot.lane.b32.xlu2 %v2070_v27, %s1608_s28  ;;  %1335 = vmatmul.msk.f32.gmra.mxu0 %vm65_vm0, %v61_v16 }
 0xb6d   :  { %v760_v48 = vpop.permute.xlu2 %759 }
 0xb6e   :  { %v762_v28 = vmul.f32 %v760_v48, %v743_v8 }
 0xb70   :  { %771 = vrot.lane.b32.xlu1 %v762_v28, %s1609_s6  ;;  %v2081_v29 = vsel %vm2355_vm2, %v762_v28, %v2021_v51 }
 0xb71   :  { %781 = vrot.lane.b32.xlu0 %v2081_v29, %s1611_s9 }
 0xbc3   :  { %v776_v30 = vpop.permute.xlu2 %775 }
 0xbe2   :  { %v772_v31 = vpop.permute.xlu1 %771 }
 0xbe3   :  { %v778_v32 = vsel %vm65_vm0, %v772_v31, %v776_v30  ;;  %v782_v34 = vpop.permute.xlu0 %781  ;;  %v2111_v30 = vsel %vm2355_vm2, %v2060_v12, %v2057_v21 }
 0xbe4   :  { %v779_v33 = vsel %vm223_vm8, %v778_v32, 0.0  ;;  %v784_v51 = vsel %vm223_vm8, 0.0, %v782_v34 }
 0xbe5   :  { %1359 = vmatmul.msk.f32.vlgmr.msrb.gmra.mxu3 %vm230_vm7, %v779_v33 }
 0xbe6   :  { %v122_v38 = vpop.f32.mrf.mxu0 }
 0xbe7   :  { %v123_v40 = vadd.f32 %v122_v38, %v1689_v11 }
 0xbed   :  { %1360 = vmatmul.msk.f32.gmra.mxu3 %vm230_vm7, %v784_v51  ;;  %v2122_v51 = vsel %vm630_vm15, %v2049_v53, %v2046_v50 }
 0xc68   :  { %v808_v35 = vpop.f32.mrf.mxu3 }
 0xc69   :  { %v814_v37 = vadd.f32 %v808_v35, %v1843_v63 }
 0xc6b   :  { %1470 = vtanh.f32 %v814_v37  ;;  %v1361_v60 = vmul.f32 -1.442695, %v814_v37 }
 0xc70   :  { %v811_v43 = vpop.f32.mrf.mxu3 }
 0xc71   :  { %v1471_v44 = vpop.eup %1470  ;;  %v862_v45 = vadd.f32 %v811_v43, %v123_v40 }
 0xc72   :  { %837 = vrot.lane.b32.xlu1 %v1471_v44, %s1608_s28 }
 0xc73   :  { %1472 = vtanh.f32 %v862_v45  ;;  %v1362_v56 = vmul.f32 -1.442695, %v862_v45 }
 0xc75   :  { %1474 = vpow2.f32 %v1362_v56 }
 0xc79   :  { %v1473_v55 = vpop.eup %1472 }
 0xc7a   :  { %885 = vrot.lane.b32.xlu2 %v1473_v55, %s1608_s28 }
 0xc7b   :  { %v1475_v57 = vpop.eup %1474 }
 0xc7c   :  { %v866_v59 = vadd.f32 1.0, %v1475_v57 }
 0xc7e   :  { %1476 = vrcp.f32 %v866_v59  ;;  %v878_v58 = vand.u32 2147483648, %v866_v59  ;;  %vm872_vm5 = vweird.f32 %v866_v59  ;;  %v876_v18 = vand.u32 2147483647, %v866_v59 }
 0xc7f   :  { %1478 = vpow2.f32 %v1361_v60 }
 0xc80   :  { %v879_v5 = vor.u32 1.1754944e-38, %v878_v58  ;;  %vm877_vm10 = vcmp.eq.f32.partialorder %v876_v18, 8.507059e+37 }
 0xc84   :  { %v1477_v0 = vpop.eup %1476 }
 0xc85   :  { %v1479_v1 = vpop.eup %1478  ;;  %v868_v4 = vmul.f32 %v1477_v0, %v866_v59  ;;  %vm873_vm4 = vweird.f32 %v1477_v0 }
 0xc86   :  { %v818_v6 = vadd.f32 1.0, %v1479_v1  ;;  %vm874_vm9 = vmor %vm872_vm5, %vm873_vm4 }
 0xc87   :  { %v869_v36 = vsub.f32 1.0, %v868_v4 }
 0xc88   :  { %1480 = vrcp.f32 %v818_v6  ;;  %v830_v24 = vand.u32 2147483648, %v818_v6  ;;  %vm824_vm13 = vweird.f32 %v818_v6  ;;  %v828_v19 = vand.u32 2147483647, %v818_v6 }
 0xc89   :  { %v870_v39 = vmul.f32 %v1477_v0, %v869_v36 }
 0xc8a   :  { %v831_v2 = vor.u32 1.1754944e-38, %v830_v24  ;;  %vm829_vm4 = vcmp.eq.f32.partialorder %v828_v19, 8.507059e+37 }
 0xc8b   :  { %v871_v10 = vadd.f32 %v1477_v0, %v870_v39 }
 0xc8d   :  { %v875_v62 = vsel %vm874_vm9, %v1477_v0, %v871_v10 }
 0xc8e   :  { %v1481_v17 = vpop.eup %1480  ;;  %v880_v47 = vsel %vm877_vm10, %v879_v5, %v875_v62 }
 0xc8f   :  { %v820_v41 = vmul.f32 %v1481_v17, %v818_v6  ;;  %vm825_vm12 = vweird.f32 %v1481_v17  ;;  %v883_v31 = vmul.f32 %v880_v47, %v2111_v30 }
 0xc90   :  { %vm826_vm14 = vmor %vm824_vm13, %vm825_vm12  ;;  %vm998_vm13 = vcmp.gt.s32.totalorder %v2102_v49, 6 }
 0xc91   :  { %v821_v14 = vsub.f32 1.0, %v820_v41 }
 0xc93   :  { %v822_v46 = vmul.f32 %v1481_v17, %v821_v14 }
 0xc95   :  { %v823_v54 = vadd.f32 %v1481_v17, %v822_v46 }
 0xc97   :  { %v827_v25 = vsel %vm826_vm14, %v1481_v17, %v823_v54 }
 0xc98   :  { %v832_v28 = vsel %vm829_vm4, %v831_v2, %v827_v25 }
 0xc99   :  { %v835_v35 = vmul.f32 %v832_v28, %v2122_v51 }
 0xcd4   :  { %v886_v7 = vpop.permute.xlu2 %885 }
 0xcd5   :  { %v888_v8 = vmul.f32 %v886_v7, %v880_v47 }
 0xcd7   :  { %890 = vrot.lane.b32.xlu1 %v888_v8, %s1609_s6 }
 0xcdf   :  { %902 = vperm.xlu1 %1397, %v900_v52  }
 0xce4   :  { %v838_v48 = vpop.permute.xlu1 %837 }
 0xce5   :  { %v840_v16 = vmul.f32 %v838_v48, %v832_v28 }
 0xce7   :  { %842 = vrot.lane.b32.xlu0 %v840_v16, %s1609_s6 }
 0xd49   :  { %v891_v32 = vpop.permute.xlu1 %890 }
 0xd4a   :  { %v2114_v33 = vadd.f32 %v891_v32, %v883_v31 }
 0xd4c   :  { %1482 = vtanh.f32 %v2114_v33 }
 0xd51   :  { %v2139_v50 = vpop.permute.xlu1 %902 }
 0xd52   :  { %v1483_v34 = vpop.eup %1482  ;;  %vm904_vm5 = vcmp.eq.s32.totalorder %v2139_v50, 1 }
 0xd53   :  { %896 = vrot.lane.b32.xlu0 %v1483_v34, %s1608_s28 }
 0xd59   :  { %v843_v21 = vpop.permute.xlu0 %842 }
 0xd5a   :  { %v2125_v12 = vadd.f32 %v843_v21, %v835_v35  ;;  %v1037_v35 = vsel %vm998_vm13, 1, %v1610_v23 }
 0xd5c   :  { %1484 = vtanh.f32 %v2125_v12 }
 0xd62   :  { %v1485_v37 = vpop.eup %1484 }
 0xd63   :  { %848 = vrot.lane.b32.xlu2 %v1485_v37, %s1608_s28 }
 0xdbd   :  { %v849_v38 = vpop.permute.xlu2 %848 }
 0xdbe   :  { %v2129_v40 = vmul.f32 %v849_v38, %v832_v28 }
 0xdc0   :  { %v2135_v43 = vsel %vm2355_vm2, %v2129_v40, %v2070_v27  ;;  %v62_v27 = vld [vmem:[%s2349_s1 + $0x30] sm:$0xff] }
 0xdc1   :  { %912 = vrot.lane.b32.xlu0 %v2135_v43, %s1608_s28  ;;  %1336 = vmatmul.msk.f32.gmra.mxu0 %vm65_vm0, %v62_v27 }
 0xdc5   :  { %v897_v53 = vpop.permute.xlu0 %896 }
 0xdc6   :  { %v899_v44 = vmul.f32 %v897_v53, %v880_v47 }
 0xdc8   :  { %908 = vrot.lane.b32.xlu2 %v899_v44, %s1609_s6  ;;  %v2146_v45 = vsel %vm904_vm5, %v899_v44, %v2081_v29 }
 0xdc9   :  { %918 = vrot.lane.b32.xlu1 %v2146_v45, %s1611_s9 }
 0xe22   :  { %v909_v55 = vpop.permute.xlu2 %908 }
 0xe33   :  { %v913_v56 = vpop.permute.xlu0 %912 }
 0xe34   :  { %v915_v57 = vsel %vm65_vm0, %v909_v55, %v913_v56 }
 0xe35   :  { %v916_v59 = vsel %vm223_vm8, %v915_v57, 0.0  ;;  %v2171_v57 = vsel %vm2355_vm2, %v2125_v12, %v2122_v51 }
 0xe36   :  { %1363 = vmatmul.msk.f32.vlgmr.msra.gmra.mxu1 %vm230_vm7, %v916_v59 }
 0xe3b   :  { %v919_v60 = vpop.permute.xlu1 %918 }
 0xe3c   :  { %v921_v29 = vsel %vm223_vm8, 0.0, %v919_v60 }
 0xe3e   :  { %1364 = vmatmul.msk.f32.gmra.mxu1 %vm230_vm7, %v921_v29  ;;  %v125_v4 = vpop.f32.mrf.mxu0 }
 0xe3f   :  { %v126_v6 = vadd.f32 %v125_v4, %v1689_v11 }
 0xeb3   :  { %v945_v0 = vpop.f32.mrf.mxu1 }
 0xeb4   :  { %v951_v1 = vadd.f32 %v945_v0, %v1843_v63  ;;  %v2181_v0 = vsel %vm904_vm5, %v2114_v33, %v2111_v30 }
 0xeb6   :  { %1486 = vtanh.f32 %v951_v1  ;;  %v1365_v41 = vmul.f32 -1.442695, %v951_v1 }
 0xebb   :  { %v948_v36 = vpop.f32.mrf.mxu1 }
 0xebc   :  { %v1487_v39 = vpop.eup %1486  ;;  %v999_v10 = vadd.f32 %v948_v36, %v126_v6 }
 0xebd   :  { %974 = vrot.lane.b32.xlu0 %v1487_v39, %s1608_s28 }
 0xebe   :  { %1488 = vtanh.f32 %v999_v10  ;;  %v1366_v58 = vmul.f32 -1.442695, %v999_v10 }
 0xec0   :  { %1490 = vpow2.f32 %v1366_v58 }
 0xec4   :  { %v1489_v17 = vpop.eup %1488 }
 0xec5   :  { %1022 = vrot.lane.b32.xlu2 %v1489_v17, %s1608_s28 }
 0xec6   :  { %v1491_v18 = vpop.eup %1490 }
 0xec7   :  { %v1003_v62 = vadd.f32 1.0, %v1491_v18 }
 0xec9   :  { %1492 = vrcp.f32 %v1003_v62  ;;  %v1015_v24 = vand.u32 2147483648, %v1003_v62  ;;  %vm1009_vm10 = vweird.f32 %v1003_v62  ;;  %v1013_v19 = vand.u32 2147483647, %v1003_v62 }
 0xeca   :  { %1494 = vpow2.f32 %v1365_v41 }
 0xecb   :  { %v1016_v48 = vor.u32 1.1754944e-38, %v1015_v24  ;;  %vm1014_vm12 = vcmp.eq.f32.partialorder %v1013_v19, 8.507059e+37 }
 0xecf   :  { %v1493_v5 = vpop.eup %1492 }
 0xed0   :  { %v1495_v7 = vpop.eup %1494  ;;  %v1005_v47 = vmul.f32 %v1493_v5, %v1003_v62  ;;  %vm1010_vm9 = vweird.f32 %v1493_v5 }
 0xed1   :  { %v955_v8 = vadd.f32 1.0, %v1495_v7  ;;  %vm1011_vm11 = vmor %vm1009_vm10, %vm1010_vm9 }
 0xed2   :  { %v1006_v14 = vsub.f32 1.0, %v1005_v47 }
 0xed3   :  { %1496 = vrcp.f32 %v955_v8  ;;  %v967_v37 = vand.u32 2147483648, %v955_v8  ;;  %vm961_vm4 = vweird.f32 %v955_v8  ;;  %v965_v38 = vand.u32 2147483647, %v955_v8 }
 0xed4   :  { %v1007_v46 = vmul.f32 %v1493_v5, %v1006_v14 }
 0xed5   :  { %v968_v44 = vor.u32 1.1754944e-38, %v967_v37  ;;  %vm966_vm10 = vcmp.eq.f32.partialorder %v965_v38, 8.507059e+37 }
 0xed6   :  { %v1008_v52 = vadd.f32 %v1493_v5, %v1007_v46 }
 0xed8   :  { %v1012_v25 = vsel %vm1011_vm11, %v1493_v5, %v1008_v52 }
 0xed9   :  { %v1497_v54 = vpop.eup %1496  ;;  %v1017_v16 = vsel %vm1014_vm12, %v1016_v48, %v1012_v25 }
 0xeda   :  { %v957_v2 = vmul.f32 %v1497_v54, %v955_v8  ;;  %vm962_vm14 = vweird.f32 %v1497_v54  ;;  %v1020_v1 = vmul.f32 %v1017_v16, %v2181_v0 }
 0xedb   :  { %vm963_vm9 = vmor %vm961_vm4, %vm962_vm14 }
 0xedc   :  { %v958_v32 = vsub.f32 1.0, %v957_v2 }
 0xede   :  { %v959_v34 = vmul.f32 %v1497_v54, %v958_v32 }
 0xee0   :  { %v960_v21 = vadd.f32 %v1497_v54, %v959_v34 }
 0xee2   :  { %v964_v53 = vsel %vm963_vm9, %v1497_v54, %v960_v21 }
 0xee3   :  { %v969_v55 = vsel %vm966_vm10, %v968_v44, %v964_v53 }
 0xee4   :  { %v972_v59 = vmul.f32 %v969_v55, %v2171_v57 }
 0xf1f   :  { %v1023_v28 = vpop.permute.xlu2 %1022 }
 0xf20   :  { %v1025_v31 = vmul.f32 %v1023_v28, %v1017_v16 }
 0xf22   :  { %1027 = vrot.lane.b32.xlu1 %v1025_v31, %s1609_s6 }
 0xf2a   :  { %1039 = vperm.xlu1 %1397, %v1037_v35  }
 0xf2f   :  { %v975_v27 = vpop.permute.xlu0 %974 }
 0xf30   :  { %v977_v56 = vmul.f32 %v975_v27, %v969_v55 }
 0xf32   :  { %979 = vrot.lane.b32.xlu2 %v977_v56, %s1609_s6 }
 0xf8c   :  { %v980_v60 = vpop.permute.xlu2 %979 }
 0xf8d   :  { %v2174_v29 = vadd.f32 %v980_v60, %v972_v59 }
 0xf8f   :  { %1498 = vtanh.f32 %v2174_v29 }
 0xf94   :  { %v1028_v4 = vpop.permute.xlu1 %1027 }
 0xf95   :  { %v1499_v6 = vpop.eup %1498  ;;  %v2184_v36 = vadd.f32 %v1028_v4, %v1020_v1 }
 0xf96   :  { %985 = vrot.lane.b32.xlu2 %v1499_v6, %s1608_s28 }
 0xf97   :  { %1500 = vtanh.f32 %v2184_v36 }
 0xf9c   :  { %v2199_v33 = vpop.permute.xlu1 %1039 }
 0xf9d   :  { %v1501_v51 = vpop.eup %1500  ;;  %vm1041_vm11 = vcmp.eq.s32.totalorder %v2199_v33, 1 }
 0xf9e   :  { %1033 = vrot.lane.b32.xlu0 %v1501_v51, %s1608_s28 }
 0xff0   :  { %v986_v12 = vpop.permute.xlu2 %985 }
 0xff1   :  { %v2189_v39 = vmul.f32 %v986_v12, %v969_v55 }
 0xff3   :  { %v2195_v30 = vsel %vm904_vm5, %v2189_v39, %v2135_v43  ;;  %v63_v43 = vld [vmem:[%s2349_s1 + $0x38] sm:$0xff]  ;;  %v991_v33 = vsel %vm904_vm5, %v2189_v39, 0.0  ;;  %s1612_s1 = smov [#allocation5]  }
 0xff4   :  { %1049 = vrot.lane.b32.xlu2 %v2195_v30, %s1608_s28  ;;  %1337 = vmatmul.msk.f32.gmra.mxu0 %vm65_vm0, %v63_v43 }
0x1010   :  { %v1034_v10 = vpop.permute.xlu0 %1033 }
0x1011   :  { %v1036_v17 = vmul.f32 %v1034_v10, %v1017_v16 }
0x1013   :  { %1045 = vrot.lane.b32.xlu1 %v1036_v17, %s1609_s6  ;;  %v2206_v58 = vsel %vm1041_vm11, %v1036_v17, %v2146_v45 }
0x1014   :  { %1055 = vrot.lane.b32.xlu0 %v2206_v58, %s1611_s9 }
0x104e   :  { %v1050_v18 = vpop.permute.xlu2 %1049 }
0x1071   :  { %v128_v45 = vpop.f32.mrf.mxu0 }
0x1072   :  { %v129_v46 = vadd.f32 %v128_v45, %v1689_v11 }
0x1085   :  { %v1046_v62 = vpop.permute.xlu1 %1045 }
0x1086   :  { %v1052_v41 = vsel %vm65_vm0, %v1046_v62, %v1050_v18  ;;  %v1056_v5 = vpop.permute.xlu0 %1055 }
0x1087   :  { %v1053_v7 = vsel %vm223_vm8, %v1052_v41, 0.0  ;;  %v1058_v47 = vsel %vm223_vm8, 0.0, %v1056_v5  ;;  %v2229_v41 = vsel %vm904_vm5, %v2174_v29, %v2171_v57 }
0x1088   :  { %1367 = vmatmul.msk.f32.vlgmr.msrb.gmra.mxu0 %vm230_vm7, %v1053_v7  ;;  %1368 = vmatmul.msk.f32.vlgmr.msra.gmra.mxu3 %vm230_vm7, %v1058_v47 }
0x1105   :  { %v1082_v8 = vpop.f32.mrf.mxu0 }
0x1106   :  { %v1088_v14 = vadd.f32 %v1082_v8, %v1843_v63  ;;  %v2240_v8 = vsel %vm1041_vm11, %v2184_v36, %v2181_v0 }
0x1108   :  { %1502 = vtanh.f32 %v1088_v14  ;;  %v1369_v25 = vmul.f32 -1.442695, %v1088_v14 }
0x110b   :  { %v1085_v52 = vpop.f32.mrf.mxu3 }
0x110c   :  { %v1136_v54 = vadd.f32 %v1085_v52, %v129_v46 }
0x110e   :  { %v1503_v24 = vpop.eup %1502  ;;  %1504 = vtanh.f32 %v1136_v54  ;;  %v1370_v2 = vmul.f32 -1.442695, %v1136_v54 }
0x110f   :  { %1111 = vrot.lane.b32.xlu0 %v1503_v24, %s1608_s28  ;;  %1506 = vpow2.f32 %v1369_v25 }
0x1110   :  { %1508 = vpow2.f32 %v1370_v2 }
0x1114   :  { %v1505_v19 = vpop.eup %1504 }
0x1115   :  { %1159 = vrot.lane.b32.xlu1 %v1505_v19, %s1608_s28  ;;  %v1507_v48 = vpop.eup %1506 }
0x1116   :  { %v1092_v28 = vadd.f32 1.0, %v1507_v48  ;;  %v1509_v16 = vpop.eup %1508 }
0x1117   :  { %v1140_v31 = vadd.f32 1.0, %v1509_v16 }
0x1118   :  { %1510 = vrcp.f32 %v1092_v28  ;;  %v1104_v44 = vand.u32 2147483648, %v1092_v28  ;;  %vm1098_vm13 = vweird.f32 %v1092_v28  ;;  %v1102_v27 = vand.u32 2147483647, %v1092_v28 }
0x1119   :  { %1512 = vrcp.f32 %v1140_v31  ;;  %v1152_v6 = vand.u32 2147483648, %v1140_v31  ;;  %vm1146_vm10 = vweird.f32 %v1140_v31  ;;  %v1150_v12 = vand.u32 2147483647, %v1140_v31 }
0x111a   :  { %v1105_v59 = vor.u32 1.1754944e-38, %v1104_v44  ;;  %vm1103_vm4 = vcmp.eq.f32.partialorder %v1102_v27, 8.507059e+37 }
0x111b   :  { %v1153_v17 = vor.u32 1.1754944e-38, %v1152_v6  ;;  %vm1151_vm2 = vcmp.eq.f32.partialorder %v1150_v12, 8.507059e+37  ;;  %v443_v6 = vsel %vm356_vm3, %v1944_v20, 0.0  ;;  %vm2357_vm3 = vcmp.eq.s32.totalorder %v1955_v22, 1 }
0x111e   :  { %v1511_v32 = vpop.eup %1510 }
0x111f   :  { %v1094_v11 = vmul.f32 %v1511_v32, %v1092_v28  ;;  %v1513_v34 = vpop.eup %1512  ;;  %vm1099_vm12 = vweird.f32 %v1511_v32 }
0x1120   :  { %v1142_v21 = vmul.f32 %v1513_v34, %v1140_v31  ;;  %vm1100_vm14 = vmor %vm1098_vm13, %vm1099_vm12  ;;  %vm1147_vm9 = vweird.f32 %v1513_v34  ;;  %vm2356_vm12 = vcmp.eq.s32.totalorder %v2074_v3, 1 }
0x1121   :  { %v1095_v35 = vsub.f32 1.0, %v1094_v11  ;;  %vm1148_vm1 = vmor %vm1146_vm10, %vm1147_vm9  ;;  %v854_v12 = vsel %vm2356_vm12, %v2129_v40, 0.0  ;;  %v580_v40 = vsel %vm2357_vm3, %v2004_v15, 0.0 }
0x1122   :  { %v1143_v38 = vsub.f32 1.0, %v1142_v21 }
0x1123   :  { %v1096_v37 = vmul.f32 %v1511_v32, %v1095_v35  ;;  %v717_v35 = vsel %vm630_vm15, %v2064_v26, 0.0 }
0x1124   :  { %v1144_v55 = vmul.f32 %v1513_v34, %v1143_v38 }
0x1125   :  { %v1097_v53 = vadd.f32 %v1511_v32, %v1096_v37 }
0x1126   :  { %v1145_v60 = vadd.f32 %v1513_v34, %v1144_v55 }
0x1127   :  { %v1101_v56 = vsel %vm1100_vm14, %v1511_v32, %v1097_v53 }
0x1128   :  { %v1106_v1 = vsel %vm1103_vm4, %v1105_v59, %v1101_v56  ;;  %v1149_v10 = vsel %vm1148_vm1, %v1513_v34, %v1145_v60  ;;  %vm1135_vm1 = vcmp.gt.s32.totalorder %v2102_v49, 7  ;;  %v307_v34 = vsel %vm208_vm6, %v1873_v9, 0.0 }
0x1129   :  { %v1154_v18 = vsel %vm1151_vm2, %v1153_v17, %v1149_v10  ;;  %v1109_v5 = vmul.f32 %v1106_v1, %v2229_v41  ;;  %v1174_v52 = vsel %vm1135_vm1, 1, %v1610_v23 }
0x112a   :  { %v1157_v14 = vmul.f32 %v1154_v18, %v2240_v8 }
0x1181   :  { %v1112_v4 = vpop.permute.xlu0 %1111 }
0x1182   :  { %v1114_v51 = vmul.f32 %v1112_v4, %v1106_v1 }
0x1184   :  { %1116 = vrot.lane.b32.xlu2 %v1114_v51, %s1609_s6 }
0x1187   :  { %v1160_v43 = vpop.permute.xlu1 %1159 }
0x1188   :  { %v1162_v62 = vmul.f32 %v1160_v43, %v1154_v18 }
0x118a   :  { %1164 = vrot.lane.b32.xlu0 %v1162_v62, %s1609_s6 }
0x11de   :  { %v1117_v7 = vpop.permute.xlu2 %1116 }
0x11df   :  { %v2232_v47 = vadd.f32 %v1117_v7, %v1109_v5 }
0x11e1   :  { %1514 = vtanh.f32 %v2232_v47  ;;  %v1127_v13 = vsel %vm1041_vm11, %v2232_v47, %v2229_v41 }
0x11e7   :  { %v1515_v45 = vpop.eup %1514 }
0x11e8   :  { %1122 = vrot.lane.b32.xlu1 %v1515_v45, %s1608_s28 }
0x11fc   :  { %v1165_v57 = vpop.permute.xlu0 %1164 }
0x11fd   :  { %v2243_v29 = vadd.f32 %v1165_v57, %v1157_v14 }
0x11ff   :  { %1516 = vtanh.f32 %v2243_v29 }
0x1205   :  { %v1517_v46 = vpop.eup %1516 }
0x1206   :  { %1170 = vrot.lane.b32.xlu2 %v1517_v46, %s1608_s28 }
0x120e   :  { %1176 = vperm.xlu2 %1395, %v1174_v52  }
0x125a   :  { %v1123_v54 = vpop.permute.xlu1 %1122 }
0x125b   :  { %v1125_v24 = vmul.f32 %v1123_v54, %v1106_v1 }
0x125d   :  { %v2252_v0 = vsel %vm1041_vm11, %v1125_v24, %v2195_v30 }
0x125e   :  { %1186 = vrot.lane.b32.xlu1 %v2252_v0, %s1608_s28 }
0x1260   :  { %v1171_v36 = vpop.permute.xlu2 %1170 }
0x1261   :  { %v1173_v19 = vmul.f32 %v1171_v36, %v1154_v18 }
0x1263   :  { %1182 = vrot.lane.b32.xlu0 %v1173_v19, %s1609_s6 }
0x1268   :  { %v2257_v25 = vpop.permute.xlu2 %1176 }
0x1269   :  { %vm1178_vm2 = vcmp.eq.s32.totalorder %v2257_v25, 1 }
0x126a   :  { %v2263_v23 = vsel %vm1178_vm2, %v1173_v19, %v2206_v58  ;;  %v1180_v39 = vsel %vm1178_vm2, %v2243_v29, %v2240_v8 }
0x126b   :  { %1192 = vrot.lane.b32.xlu0 %v2263_v23, %s1611_s9 }
0x12d0   :  { %v1187_v49 = vpop.permute.xlu1 %1186 }
0x12d5   :  { %v1183_v30 = vpop.permute.xlu0 %1182 }
0x12d6   :  { %v1189_v2 = vsel %vm65_vm0, %v1183_v30, %v1187_v49 }
0x12d7   :  { %v1190_v48 = vsel %vm223_vm8, %v1189_v2, 0.0 }
0x12d8   :  { %1371 = vmatmul.msk.f32.vlgmr.msra.gmra.mxu2 %vm230_vm7, %v1190_v48 }
0x12dd   :  { %v1193_v28 = vpop.permute.xlu0 %1192 }
0x12de   :  { %v1195_v16 = vsel %vm223_vm8, 0.0, %v1193_v28 }
0x12e0   :  { %1372 = vmatmul.msk.f32.gmra.mxu2 %vm230_vm7, %v1195_v16 }
0x135b   :  { %v1219_v31 = vpop.f32.mrf.mxu2 }
0x135c   :  { %v1224_v58 = vadd.f32 %v1219_v31, %v1843_v63  ;;  %v1128_v63 = vsel %vm1041_vm11, %v1125_v24, 0.0 }
0x135e   :  { %1518 = vtanh.f32 %v1224_v58  ;;  %v1373_v21 = vmul.f32 -1.442695, %v1224_v58 }
0x1360   :  { %1520 = vpow2.f32 %v1373_v21 }
0x1363   :  { %v1222_v32 = vpop.f32.mrf.mxu2 }
0x1364   :  { %v1519_v11 = vpop.eup %1518 }
0x1365   :  { %1247 = vrot.lane.b32.xlu1 %v1519_v11, %s1608_s28 }
0x1366   :  { %v1521_v37 = vpop.eup %1520 }
0x1367   :  { %v1228_v38 = vadd.f32 1.0, %v1521_v37 }
0x1369   :  { %1522 = vrcp.f32 %v1228_v38  ;;  %v1240_v61 = vand.u32 2147483648, %v1228_v38  ;;  %vm1234_vm7 = vweird.f32 %v1228_v38  ;;  %v1238_v26 = vand.u32 2147483647, %v1228_v38 }
0x136b   :  { %v1241_v56 = vor.u32 1.1754944e-38, %v1240_v61  ;;  %vm1239_vm15 = vcmp.eq.f32.partialorder %v1238_v26, 8.507059e+37 }
0x136d   :  { %309 = vrot.lane.b32.xlu1 %v307_v34, %s1609_s6 }
0x136f   :  { %v1523_v42 = vpop.eup %1522 }
0x1370   :  { %v1230_v9 = vmul.f32 %v1523_v42, %v1228_v38  ;;  %vm1235_vm6 = vweird.f32 %v1523_v42 }
0x1371   :  { %vm1236_vm8 = vmor %vm1234_vm7, %vm1235_vm6 }
0x1372   :  { %v1231_v53 = vsub.f32 1.0, %v1230_v9 }
0x1374   :  { %v1232_v44 = vmul.f32 %v1523_v42, %v1231_v53 }
0x1375   :  { %719 = vrot.lane.b32.xlu1 %v717_v35, %s1609_s6 }
0x1376   :  { %v1233_v27 = vadd.f32 %v1523_v42, %v1232_v44 }
0x1378   :  { %v1237_v55 = vsel %vm1236_vm8, %v1523_v42, %v1233_v27 }
0x1379   :  { %v1242_v60 = vsel %vm1239_vm15, %v1241_v56, %v1237_v55 }
0x137a   :  { %v1245_v20 = vmul.f32 %v1242_v60, %v1127_v13 }
0x137d   :  { %1130 = vrot.lane.b32.xlu1 %v1128_v63, %s1609_s6 }
0x13d7   :  { %v1248_v59 = vpop.permute.xlu1 %1247 }
0x13d8   :  { %v1250_v1 = vmul.f32 %v1248_v59, %v1242_v60 }
0x13da   :  { %1252 = vrot.lane.b32.xlu2 %v1250_v1, %s1609_s6 }
0x13df   :  { %v310_v4 = vpop.permute.xlu1 %309 }
0x13e0   :  { %312 = vst.msk [vmem:[#allocation5] sm:$0xff] %vm65_vm0, %v310_v4 }
0x13e2   :  { %445 = vrot.lane.b32.xlu2 %v443_v6, %s1609_s6 }
0x13e7   :  { %v720_v51 = vpop.permute.xlu1 %719 }
0x13e8   :  { %723 = vst.msk [vmem:[#allocation5 + $0x18] sm:$0xff] %vm65_vm0, %v720_v51 }
0x13ea   :  { %856 = vrot.lane.b32.xlu2 %v854_v12, %s1609_s6 }
0x13ef   :  { %v1131_v10 = vpop.permute.xlu1 %1130 }
0x13f0   :  { %1134 = vst.msk [vmem:[#allocation5 + $0x30] sm:$0xff] %vm65_vm0, %v1131_v10 }
0x1434   :  { %v1253_v17 = vpop.permute.xlu2 %1252 }
0x1435   :  { %v1255_v43 = vadd.f32 %v1253_v17, %v1245_v20 }
0x1437   :  { %1524 = vtanh.f32 %v1255_v43  ;;  %v1263_v41 = vsel %vm1178_vm2, %v1255_v43, %v1127_v13 }
0x143c   :  { %v446_v18 = vpop.permute.xlu2 %445 }
0x143d   :  { %v1525_v62 = vpop.eup %1524  ;;  %449 = vst.msk [vmem:[#allocation5 + $0x8] sm:$0xff] %vm65_vm0, %v446_v18 }
0x143e   :  { %1258 = vrot.lane.b32.xlu0 %v1525_v62, %s1608_s28  ;;  %s1297_s28 = sshll.u32 %s1612_s1, 4  ;;  %s1298_s28 = int_to_ptr.vmem [resolvable:$true] %s1297_s28 }
0x1444   :  { %v857_v3 = vpop.permute.xlu2 %856 }
0x1445   :  { %860 = vst.msk [vmem:[#allocation5 + $0x20] sm:$0xff] %vm65_vm0, %v857_v3 }
0x1446   :  { %582 = vrot.lane.b32.xlu0 %v580_v40, %s1609_s6 }
0x144e   :  { %993 = vrot.lane.b32.xlu0 %v991_v33, %s1609_s6 }
0x1456   :  { %1271 = vrot.lane.b32.xlu0 %v2263_v23, %s1609_s6 }
0x145e   :  { %1288 = vrot.lane.b32.xlu0 %v1263_v41, %s1611_s9 }
0x14b0   :  { %v1259_v5 = vpop.permute.xlu0 %1258 }
0x14b1   :  { %v1261_v7 = vmul.f32 %v1259_v5, %v1242_v60 }
0x14b3   :  { %v1264_v22 = vsel %vm1178_vm2, %v1261_v7, 0.0  ;;  %v1262_v15 = vsel %vm1178_vm2, %v1261_v7, %v2252_v0 }
0x14b4   :  { %1266 = vrot.lane.b32.xlu2 %v1264_v22, %s1609_s6  ;;  %1276 = vrot.lane.b32.xlu1 %v1262_v15, %s1609_s6 }
0x14b8   :  { %v583_v50 = vpop.permute.xlu0 %582 }
0x14b9   :  { %586 = vst.msk [vmem:[#allocation5 + $0x10] sm:$0xff] %vm65_vm0, %v583_v50 }
0x14bc   :  { %1282 = vrot.lane.b32.xlu2 %v1180_v39, %s1611_s9  ;;  %s1310_s9 = sshll.u32 %s1613_s8, 4  ;;  %s1311_s9 = int_to_ptr.vmem [resolvable:$true] %s1310_s9 }
0x14c0   :  { %v994_v47 = vpop.permute.xlu0 %993 }
0x14c1   :  { %997 = vst.msk [vmem:[#allocation5 + $0x28] sm:$0xff] %vm65_vm0, %v994_v47 }
0x14c8   :  { %v1272_v45 = vpop.permute.xlu0 %1271 }
0x14c9   :  { %1274 = vst.msk [vmem:[#allocation6] sm:$0xff] %vm65_vm0, %v1272_v45 }
0x14d0   :  { %v1289_v14 = vpop.permute.xlu0 %1288 }
0x14d1   :  { %1292 = vst.msk [vmem:[#allocation6 + $0x18] sm:$0xff] %vm65_vm0, %v1289_v14 }
0x150e   :  { %v1267_v8 = vpop.permute.xlu2 %1266 }
0x150f   :  { %1270 = vst.msk [vmem:[#allocation5 + $0x38] sm:$0xff] %vm65_vm0, %v1267_v8 }
0x1510   :  { %1305 = dma.vmem_to_hbm [thread:$0]  %s1298_s28, 1024, %s1300_s7, [#allocation4], %s1606_s23, %s1606_s23, %s1607_s24  }
0x1516   :  { %v1283_v57 = vpop.permute.xlu2 %1282 }
0x1517   :  { %1286 = vst.msk [vmem:[#allocation6 + $0x10] sm:$0xff] %vm65_vm0, %v1283_v57 }
0x1526   :  { %v1277_v29 = vpop.permute.xlu1 %1276 }
0x1527   :  { %1280 = vst.msk [vmem:[#allocation6 + $0x8] sm:$0xff] %vm65_vm0, %v1277_v29 }
0x1528   :  { %1318 = dma.vmem_to_hbm [thread:$0]  %s1311_s9, 512, %s1313_s12, [#allocation7], %s1606_s23, %s1606_s23, %s1607_s24  }
0x1529   :  { %1601 = dma.done.wait [#allocation4], 1024  }
0x152a   :  { %1602 = vsyncadd [#allocation4], 4294966272 }
0x152b   :  { %1603 = dma.done.wait [#allocation7], 512  }
0x152c   :  { %1604 = vsyncadd [#allocation7], 4294966784 }
0x152d   :  { %1327 = vsyncpa [#allocation3], 1 }
0x152e   :  { %1328 = vsyncpa [#allocation4], 1 }
0x152f   :  { %1329 = vsyncpa [#allocation7], 1 }

</bundles_post_ra>
